<compile_context>
chip_gen: v7x
topology: tpu7x:2x2x1
jax: 0.10.0
libtpu: 0.0.40
codegen_flags: <defaults>
</compile_context>

<pallas_src>
import jax
import jax.numpy as jnp
from jax.experimental import pallas as pl
from jax.experimental.pallas import tpu as pltpu


def _round_up(x, m):
    return (x + m - 1) // m * m


def _pick_tile(dim_padded, cap, unit):
    """Largest multiple of `unit` that divides `dim_padded` and is <= cap."""
    t = min(cap, dim_padded)
    t = max(unit, (t // unit) * unit)
    while dim_padded % t:
        t -= unit
    return t


# ------------- Pallas kernel 1: tiled bf16 matmul + fused BN-statistics epilogue -------------

def _mm_stats_k1_kernel(a_ref, b_ref, o_ref, st_ref):
    # Single K tile: no accumulator scratch, dot goes straight to the output.
    @pl.when(pl.program_id(1) == 0)
    def _():
        st_ref[...] = jnp.zeros_like(st_ref)

    y = jnp.dot(a_ref[...], b_ref[...], preferred_element_type=jnp.float32)
    o_ref[...] = y
    st_ref[0:1, :] += jnp.sum(y, axis=0, keepdims=True)
    st_ref[1:2, :] += jnp.sum(y * y, axis=0, keepdims=True)


def _mm_stats_acc_kernel(a_ref, b_ref, o_ref, st_ref, acc_ref):
    i = pl.program_id(1)
    k = pl.program_id(2)

    @pl.when(jnp.logical_and(i == 0, k == 0))
    def _():
        st_ref[...] = jnp.zeros_like(st_ref)

    @pl.when(k == 0)
    def _():
        acc_ref[...] = jnp.zeros_like(acc_ref)

    acc_ref[...] += jnp.dot(a_ref[...], b_ref[...], preferred_element_type=jnp.float32)

    @pl.when(k == pl.num_programs(2) - 1)
    def _():
        y = acc_ref[...]
        o_ref[...] = y
        st_ref[0:1, :] += jnp.sum(y, axis=0, keepdims=True)
        st_ref[1:2, :] += jnp.sum(y * y, axis=0, keepdims=True)


def matmul_stats(a, wp):
    """a: (Mp, Kp) bf16 zero-padded, wp: (Kp, Np) bf16 zero-padded (pre-packed weights).

    Returns (y, stats) with y = a @ wp in f32 and stats[0, :] = per-column sum of y,
    stats[1, :] = per-column sum of y*y (rows 2..7 unused). Zero padding in a / wp
    contributes exactly zero to both the output and the statistics.
    """
    Mp, Kp = a.shape
    Kp2, Np = wp.shape
    assert Kp == Kp2 and Mp % 8 == 0 and Kp % 128 == 0 and Np % 128 == 0

    # Tile selection: divisors of the padded dims; bigger N/K tiles when M is small
    # (decoder / bottleneck style shapes) to amortize per-grid-step overhead.
    # Tiles stay small enough to fit comfortably in v7x's 64 MiB VMEM as well.
    small_m = Mp <= 128
    tm = _pick_tile(Mp, Mp if Mp <= 256 else 256, 8)
    tn = _pick_tile(Np, 512 if small_m else 256, 128)
    tk = _pick_tile(Kp, 1024 if small_m else 512, 128)
    gi, gj, gk = Mp // tm, Np // tn, Kp // tk

    out_shape = (jax.ShapeDtypeStruct((Mp, Np), jnp.float32),
                 jax.ShapeDtypeStruct((8, Np), jnp.float32))

    if gk == 1:
        # K fits in one tile: skip the accumulator scratch and the K grid axis.
        return pl.pallas_call(
            _mm_stats_k1_kernel,
            out_shape=out_shape,
            grid_spec=pltpu.PrefetchScalarGridSpec(
                num_scalar_prefetch=0,
                grid=(gj, gi),
                in_specs=[
                    pl.BlockSpec((tm, tk), lambda j, i: (i, 0)),
                    pl.BlockSpec((tk, tn), lambda j, i: (0, j)),
                ],
                out_specs=[
                    pl.BlockSpec((tm, tn), lambda j, i: (i, j)),
                    pl.BlockSpec((8, tn), lambda j, i: (0, j)),
                ],
            ),
            compiler_params=pltpu.CompilerParams(
                dimension_semantics=("parallel", "arbitrary")),
        )(a, wp)

    return pl.pallas_call(
        _mm_stats_acc_kernel,
        out_shape=out_shape,
        grid_spec=pltpu.PrefetchScalarGridSpec(
            num_scalar_prefetch=0,
            grid=(gj, gi, gk),
            in_specs=[
                pl.BlockSpec((tm, tk), lambda j, i, k: (i, k)),
                pl.BlockSpec((tk, tn), lambda j, i, k: (k, j)),
            ],
            out_specs=[
                pl.BlockSpec((tm, tn), lambda j, i, k: (i, j)),
                pl.BlockSpec((8, tn), lambda j, i, k: (0, j)),
            ],
            scratch_shapes=[pltpu.VMEM((tm, tn), jnp.float32)],
        ),
        compiler_params=pltpu.CompilerParams(
            dimension_semantics=("parallel", "arbitrary", "arbitrary")),
    )(a, wp)


# ------------- Pallas kernel 2: fused BatchNorm(affine) + LeakyReLU(0.01) -------------

def _bn_lrelu_kernel(x_ref, sc_ref, sh_ref, o_ref):
    y = x_ref[...] * sc_ref[...] + sh_ref[...]
    o_ref[...] = jnp.where(y > 0, y, jnp.float32(0.01) * y)


def bn_lrelu_2d(y2d, scale_l, shift_l):
    R, L = y2d.shape
    Rp = _round_up(R, 8)
    tr = _pick_tile(Rp, 256, 8)
    y_p = jnp.pad(y2d, ((0, Rp - R), (0, 0)))
    out = pl.pallas_call(
        _bn_lrelu_kernel,
        out_shape=jax.ShapeDtypeStruct((Rp, L), jnp.float32),
        grid_spec=pltpu.PrefetchScalarGridSpec(
            num_scalar_prefetch=0,
            grid=(Rp // tr,),
            in_specs=[
                pl.BlockSpec((tr, L), lambda i: (i, 0)),
                pl.BlockSpec((1, L), lambda i: (0, 0)),
                pl.BlockSpec((1, L), lambda i: (0, 0)),
            ],
            out_specs=pl.BlockSpec((tr, L), lambda i: (i, 0)),
        ),
        compiler_params=pltpu.CompilerParams(dimension_semantics=("parallel",)),
    )(y_p, scale_l.reshape(1, L), shift_l.reshape(1, L))
    return out[:R]


def apply_bn_lrelu(y2d, scale, shift, nb, h, w, c):
    # Lane-dense layout: when C < 128 use (NB*H, W*C) so stores are unmasked full vsts.
    if c % 128 != 0 and (w * c) % 128 == 0:
        out = bn_lrelu_2d(y2d.reshape(nb * h, w * c),
                          jnp.tile(scale, w), jnp.tile(shift, w))
    else:
        out = bn_lrelu_2d(y2d, scale, shift)
    return out.reshape(nb, h, w, c)


# ------------- conv building block: im2col glue + fused matmul/BN-stats kernel -------------

def _im2col3x3(x):
    # x: (NB, H, W, C) -> (NB*H*W, 9*C), tap order (ki, kj, c) matching the weight packing.
    nb, h, w, c = x.shape
    xp = jnp.pad(x, ((0, 0), (1, 1), (1, 1), (0, 0)))
    cols = [xp[:, ki:ki + h, kj:kj + w, :] for ki in range(3) for kj in range(3)]
    return jnp.concatenate(cols, axis=-1).reshape(nb * h * w, 9 * c)


def conv3x3_bn_lrelu(x, pk, eps=1e-5):
    """Conv2d(k=3, p=1, no bias) -> BatchNorm2d(training-mode batch stats) -> LeakyReLU(0.01).

    x: (NB, H, W, Cin) f32.  pk['wp']: pre-packed (Kp, Np) bf16 weights;
    pk['gamma'], pk['beta']: (Cout,) f32 BN affine parameters.
    """
    nb, h, w, cin = x.shape
    cout = pk['gamma'].shape[0]
    Kp, Np = pk['wp'].shape

    a = _im2col3x3(x.astype(jnp.bfloat16))            # (M, 9*Cin) bf16
    M, K = a.shape
    Mp = _round_up(M, 8)
    a = jnp.pad(a, ((0, Mp - M), (0, Kp - K)))        # K padded only to 128 multiple

    y_pad, stats = matmul_stats(a, pk['wp'])          # y_pad: (Mp, Np) f32

    # BatchNorm training-mode batch statistics from the fused epilogue (biased variance,
    # matching PyTorch's normalization in train mode). Padded rows/cols contribute zero.
    s1 = stats[0, :cout]
    s2 = stats[1, :cout]
    mean = s1 / M
    var = jnp.maximum(s2 / M - mean * mean, 0.0)
    scale = pk['gamma'] * jax.lax.rsqrt(var + eps)
    shift = pk['beta'] - mean * scale

    y = y_pad[:M, :cout]
    return apply_bn_lrelu(y, scale, shift, nb, h, w, cout)


def double_conv_forward(packed, x_nchw, eps=1e-5):
    x = jnp.transpose(x_nchw, (0, 2, 3, 1))           # NCHW -> NHWC
    y = conv3x3_bn_lrelu(x, packed['c1'], eps)
    y = conv3x3_bn_lrelu(y, packed['c2'], eps)
    return jnp.transpose(y, (0, 3, 1, 2))             # NHWC -> NCHW


# ------------- parameters: PyTorch-shaped init + one-time packing (outside jit) -------------

def init_double_conv_params(key, in_ch, out_ch, mid_ch=None):
    if mid_ch is None:
        mid_ch = out_ch
    k1, k2, k3, k4 = jax.random.split(key, 4)

    def conv_w(k, cin, cout):
        return jax.random.normal(k, (cout, cin, 3, 3), jnp.float32) / jnp.sqrt(cin * 9.0)

    # Conv biases are omitted: a bias followed by training-mode BatchNorm cancels exactly,
    # so the forward pass is identical to the PyTorch module (train mode).
    return dict(
        w1=conv_w(k1, in_ch, mid_ch),
        g1=1.0 + 0.1 * jax.random.normal(k3, (mid_ch,), jnp.float32),
        b1=0.1 * jax.random.normal(k4, (mid_ch,), jnp.float32),
        w2=conv_w(k2, mid_ch, out_ch),
        g2=jnp.ones((out_ch,), jnp.float32),
        b2=0.05 * jnp.ones((out_ch,), jnp.float32),
    )


def pack_double_conv_params(p):
    """One-time weight packing (outside jit): (Cout,Cin,3,3) -> padded (Kp, Np) bf16."""
    def pack_w(w):
        cout, cin, _, _ = w.shape
        K = 9 * cin
        Kp, Np = _round_up(K, 128), _round_up(cout, 128)
        wm = jnp.transpose(w, (2, 3, 1, 0)).reshape(K, cout)     # (kh,kw,cin) x cout
        return jnp.pad(wm, ((0, Kp - K), (0, Np - cout))).astype(jnp.bfloat16)

    return dict(
        c1=dict(wp=pack_w(p['w1']), gamma=p['g1'], beta=p['b1']),
        c2=dict(wp=pack_w(p['w2']), gamma=p['g2'], beta=p['b2']),
    )


# ------------- pure-JAX reference (f32) for correctness checking -------------

def _reference_double_conv(x_nchw, p, eps=1e-5):
    def block(x, w, g, b):
        y = jax.lax.conv_general_dilated(
            x, w, window_strides=(1, 1), padding="SAME",
            dimension_numbers=("NCHW", "OIHW", "NCHW"))
        mean = jnp.mean(y, axis=(0, 2, 3), keepdims=True)
        var = jnp.var(y, axis=(0, 2, 3), keepdims=True)
        y = (y - mean) * jax.lax.rsqrt(var + eps) * g.reshape(1, -1, 1, 1) + b.reshape(1, -1, 1, 1)
        return jnp.where(y > 0, y, 0.01 * y)

    y = block(x_nchw, p['w1'], p['g1'], p['b1'])
    return block(y, p['w2'], p['g2'], p['b2'])


if __name__ == "__main__":
    key = jax.random.PRNGKey(0)
    pkey, xkey = jax.random.split(key)

    # DoubleConv(in_channels=4, out_channels=32) on a (2, 4, 16, 16) input.
    in_ch, out_ch = 4, 32
    params = init_double_conv_params(pkey, in_ch, out_ch)
    packed = pack_double_conv_params(params)          # pre-packed bf16 weights, once
    x = jax.random.normal(xkey, (2, in_ch, 16, 16), jnp.float32)

    fwd = jax.jit(double_conv_forward)
    out = fwd(packed, x)
    jax.block_until_ready(out)
    assert out.shape == (2, out_ch, 16, 16), out.shape
    assert bool(jnp.all(jnp.isfinite(out)))
    ref = _reference_double_conv(x, params)
    err = float(jnp.max(jnp.abs(out - ref)))
    assert err < 0.15, f"max abs err vs f32 reference: {err}"

    # Second config exercises the multi-K-tile accumulator path (K = 9*96 -> 7 K tiles).
    params2 = init_double_conv_params(jax.random.PRNGKey(1), 4, 96)
    packed2 = pack_double_conv_params(params2)
    out2 = jax.jit(double_conv_forward)(packed2, x)
    jax.block_until_ready(out2)
    assert out2.shape == (2, 96, 16, 16), out2.shape
    ref2 = _reference_double_conv(x, params2)
    err2 = float(jnp.max(jnp.abs(out2 - ref2)))
    assert err2 < 0.15, f"max abs err vs f32 reference (cfg2): {err2}"

    print("KERNEL_OK")
</pallas_src>

<mosaic_0001>
module attributes {stable_mosaic.version = 11 : i64} {
  func.func @_mm_stats_k1_kernel(%arg0: i32, %arg1: i32, %arg2: memref<256x128xbf16, #tpu.memory_space<vmem>>, %arg3: memref<128x128xbf16, #tpu.memory_space<vmem>>, %arg4: memref<256x128xf32, #tpu.memory_space<vmem>>, %arg5: memref<8x128xf32, #tpu.memory_space<vmem>>) attributes {dimension_semantics = [#tpu.dimension_semantics<parallel>, #tpu.dimension_semantics<arbitrary>], iteration_bounds = array<i64: 1, 2>, scalar_prefetch = 0 : i64, scratch_operands = 0 : i64, tpu.core_type = #tpu.core_type<tc>, window_params = [{transform_indices = @transform_0, window_bounds = array<i64: 256, 128>}, {transform_indices = @transform_1, window_bounds = array<i64: 128, 128>}, {transform_indices = @transform_2, window_bounds = array<i64: 256, 128>}, {transform_indices = @transform_3, window_bounds = array<i64: 8, 128>}]} {
    %c0_i32 = arith.constant 0 : i32
    %0 = arith.cmpi eq, %arg1, %c0_i32 : i32
    %1 = arith.extui %0 : i1 to i32
    %c0_i32_0 = arith.constant 0 : i32
    %2 = arith.cmpi ne, %1, %c0_i32_0 : i32
    scf.if %2 {
      %cst_15 = arith.constant 0.000000e+00 : f32
      %18 = vector.broadcast %cst_15 : f32 to vector<8x128xf32>
      %c0_16 = arith.constant 0 : index
      %c0_17 = arith.constant 0 : index
      %19 = vector.load %arg5[%c0_16, %c0_17] : memref<8x128xf32, #tpu.memory_space<vmem>>, vector<8x128xf32>
      tpu.vector_store %arg5[%c0_16, %c0_17], %18 {strides = array<i32>} : memref<8x128xf32, #tpu.memory_space<vmem>>, vector<8x128xf32>,
    } else {
    }
    %c0 = arith.constant 0 : index
    %c0_1 = arith.constant 0 : index
    %3 = vector.load %arg2[%c0, %c0_1] : memref<256x128xbf16, #tpu.memory_space<vmem>>, vector<256x128xbf16>
    %c0_2 = arith.constant 0 : index
    %c0_3 = arith.constant 0 : index
    %4 = vector.load %arg3[%c0_2, %c0_3] : memref<128x128xbf16, #tpu.memory_space<vmem>>, vector<128x128xbf16>
    %cst = arith.constant dense<0.000000e+00> : vector<256x128xf32>
    %5 = tpu.matmul %3, %4, %cst {dimension_numbers = #tpu.dot_dimension_numbers<[1], [0], [0], [1], [0, 0, 1, 1], [], []>} : vector<256x128xbf16>, vector<128x128xbf16>, vector<256x128xf32> -> vector<256x128xf32>
    %c0_4 = arith.constant 0 : index
    %c0_5 = arith.constant 0 : index
    %6 = vector.load %arg4[%c0_4, %c0_5] : memref<256x128xf32, #tpu.memory_space<vmem>>, vector<256x128xf32>
    tpu.vector_store %arg4[%c0_4, %c0_5], %5 {strides = array<i32>} : memref<256x128xf32, #tpu.memory_space<vmem>>, vector<256x128xf32>,
    %c0_6 = arith.constant 0 : index
    %c0_7 = arith.constant 0 : index
    %7 = vector.load %arg5[%c0_6, %c0_7] : memref<8x128xf32, #tpu.memory_space<vmem>>, vector<1x128xf32>
    %cst_8 = arith.constant dense<0.000000e+00> : vector<128xf32>
    %8 = vector.multi_reduction <add>, %5, %cst_8 [0] : vector<256x128xf32> to vector<128xf32>
    %9 = vector.shape_cast %8 : vector<128xf32> to vector<1x128xf32>
    %10 = arith.addf %7, %9 : vector<1x128xf32>
    %c0_9 = arith.constant 0 : index
    %c0_10 = arith.constant 0 : index
    %11 = vector.load %arg5[%c0_9, %c0_10] : memref<8x128xf32, #tpu.memory_space<vmem>>, vector<1x128xf32>
    tpu.vector_store %arg5[%c0_9, %c0_10], %10 {strides = array<i32>} : memref<8x128xf32, #tpu.memory_space<vmem>>, vector<1x128xf32>,
    %c1 = arith.constant 1 : index
    %c0_11 = arith.constant 0 : index
    %12 = vector.load %arg5[%c1, %c0_11] : memref<8x128xf32, #tpu.memory_space<vmem>>, vector<1x128xf32>
    %13 = arith.mulf %5, %5 : vector<256x128xf32>
    %cst_12 = arith.constant dense<0.000000e+00> : vector<128xf32>
    %14 = vector.multi_reduction <add>, %13, %cst_12 [0] : vector<256x128xf32> to vector<128xf32>
    %15 = vector.shape_cast %14 : vector<128xf32> to vector<1x128xf32>
    %16 = arith.addf %12, %15 : vector<1x128xf32>
    %c1_13 = arith.constant 1 : index
    %c0_14 = arith.constant 0 : index
    %17 = vector.load %arg5[%c1_13, %c0_14] : memref<8x128xf32, #tpu.memory_space<vmem>>, vector<1x128xf32>
    tpu.vector_store %arg5[%c1_13, %c0_14], %16 {strides = array<i32>} : memref<8x128xf32, #tpu.memory_space<vmem>>, vector<1x128xf32>,
    return
  }
  func.func @transform_0(%arg0: i32, %arg1: i32) -> (i32, i32) {
    %c0_i32 = arith.constant 0 : i32
    %c0_i32_0 = arith.constant 0 : i32
    return %arg1, %c0_i32 : i32, i32
  }
  func.func @transform_1(%arg0: i32, %arg1: i32) -> (i32, i32) {
    %c0_i32 = arith.constant 0 : i32
    %c0_i32_0 = arith.constant 0 : i32
    return %c0_i32, %arg0 : i32, i32
  }
  func.func @transform_2(%arg0: i32, %arg1: i32) -> (i32, i32) {
    %c0_i32 = arith.constant 0 : i32
    return %arg1, %arg0 : i32, i32
  }
  func.func @transform_3(%arg0: i32, %arg1: i32) -> (i32, i32) {
    %c0_i32 = arith.constant 0 : i32
    %c0_i32_0 = arith.constant 0 : i32
    return %c0_i32, %arg0 : i32, i32
  }
}

module attributes {stable_mosaic.version = 11 : i64} {
  func.func @_bn_lrelu_kernel(%arg0: i32, %arg1: memref<32x512xf32, #tpu.memory_space<vmem>>, %arg2: memref<1x512xf32, #tpu.memory_space<vmem>>, %arg3: memref<1x512xf32, #tpu.memory_space<vmem>>, %arg4: memref<32x512xf32, #tpu.memory_space<vmem>>) attributes {dimension_semantics = [#tpu.dimension_semantics<parallel>], iteration_bounds = array<i64: 1>, scalar_prefetch = 0 : i64, scratch_operands = 0 : i64, tpu.core_type = #tpu.core_type<tc>, window_params = [{transform_indices = @transform_0, window_bounds = array<i64: 32, 512>}, {pipeline_mode = #tpu.pipeline_mode<synchronous>, transform_indices = @transform_1, window_bounds = array<i64: 1, 512>}, {pipeline_mode = #tpu.pipeline_mode<synchronous>, transform_indices = @transform_2, window_bounds = array<i64: 1, 512>}, {transform_indices = @transform_3, window_bounds = array<i64: 32, 512>}]} {
    %c0 = arith.constant 0 : index
    %c0_0 = arith.constant 0 : index
    %0 = vector.load %arg1[%c0, %c0_0] : memref<32x512xf32, #tpu.memory_space<vmem>>, vector<32x512xf32>
    %c0_1 = arith.constant 0 : index
    %c0_2 = arith.constant 0 : index
    %1 = vector.load %arg2[%c0_1, %c0_2] : memref<1x512xf32, #tpu.memory_space<vmem>>, vector<1x512xf32>
    %2 = vector.broadcast %1 : vector<1x512xf32> to vector<32x512xf32>
    %3 = arith.mulf %0, %2 : vector<32x512xf32>
    %c0_3 = arith.constant 0 : index
    %c0_4 = arith.constant 0 : index
    %4 = vector.load %arg3[%c0_3, %c0_4] : memref<1x512xf32, #tpu.memory_space<vmem>>, vector<1x512xf32>
    %5 = vector.broadcast %4 : vector<1x512xf32> to vector<32x512xf32>
    %6 = arith.addf %3, %5 : vector<32x512xf32>
    %cst = arith.constant 0.000000e+00 : f32
    %7 = vector.broadcast %cst : f32 to vector<32x512xf32>
    %8 = arith.cmpf ogt, %6, %7 : vector<32x512xf32>
    %cst_5 = arith.constant 0.00999999977 : f32
    %9 = vector.broadcast %cst_5 : f32 to vector<32x512xf32>
    %10 = arith.mulf %9, %6 : vector<32x512xf32>
    %11 = arith.select %8, %6, %10 : vector<32x512xi1>, vector<32x512xf32>
    %c0_6 = arith.constant 0 : index
    %c0_7 = arith.constant 0 : index
    %12 = vector.load %arg4[%c0_6, %c0_7] : memref<32x512xf32, #tpu.memory_space<vmem>>, vector<32x512xf32>
    tpu.vector_store %arg4[%c0_6, %c0_7], %11 {strides = array<i32>} : memref<32x512xf32, #tpu.memory_space<vmem>>, vector<32x512xf32>,
    return
  }
  func.func @transform_0(%arg0: i32) -> (i32, i32) {
    %c0_i32 = arith.constant 0 : i32
    %c0_i32_0 = arith.constant 0 : i32
    return %arg0, %c0_i32 : i32, i32
  }
  func.func @transform_1(%arg0: i32) -> (i32, i32) {
    %c0_i32 = arith.constant 0 : i32
    %c0_i32_0 = arith.constant 0 : i32
    %c0_i32_1 = arith.constant 0 : i32
    return %c0_i32, %c0_i32_0 : i32, i32
  }
  func.func @transform_2(%arg0: i32) -> (i32, i32) {
    %c0_i32 = arith.constant 0 : i32
    %c0_i32_0 = arith.constant 0 : i32
    %c0_i32_1 = arith.constant 0 : i32
    return %c0_i32, %c0_i32_0 : i32, i32
  }
  func.func @transform_3(%arg0: i32) -> (i32, i32) {
    %c0_i32 = arith.constant 0 : i32
    %c0_i32_0 = arith.constant 0 : i32
    return %arg0, %c0_i32 : i32, i32
  }
}

module attributes {stable_mosaic.version = 11 : i64} {
  func.func @_mm_stats_k1_kernel(%arg0: i32, %arg1: i32, %arg2: memref<256x384xbf16, #tpu.memory_space<vmem>>, %arg3: memref<384x128xbf16, #tpu.memory_space<vmem>>, %arg4: memref<256x128xf32, #tpu.memory_space<vmem>>, %arg5: memref<8x128xf32, #tpu.memory_space<vmem>>) attributes {dimension_semantics = [#tpu.dimension_semantics<parallel>, #tpu.dimension_semantics<arbitrary>], iteration_bounds = array<i64: 1, 2>, scalar_prefetch = 0 : i64, scratch_operands = 0 : i64, tpu.core_type = #tpu.core_type<tc>, window_params = [{transform_indices = @transform_0, window_bounds = array<i64: 256, 384>}, {transform_indices = @transform_1, window_bounds = array<i64: 384, 128>}, {transform_indices = @transform_2, window_bounds = array<i64: 256, 128>}, {transform_indices = @transform_3, window_bounds = array<i64: 8, 128>}]} {
    %c0_i32 = arith.constant 0 : i32
    %0 = arith.cmpi eq, %arg1, %c0_i32 : i32
    %1 = arith.extui %0 : i1 to i32
    %c0_i32_0 = arith.constant 0 : i32
    %2 = arith.cmpi ne, %1, %c0_i32_0 : i32
    scf.if %2 {
      %cst_15 = arith.constant 0.000000e+00 : f32
      %18 = vector.broadcast %cst_15 : f32 to vector<8x128xf32>
      %c0_16 = arith.constant 0 : index
      %c0_17 = arith.constant 0 : index
      %19 = vector.load %arg5[%c0_16, %c0_17] : memref<8x128xf32, #tpu.memory_space<vmem>>, vector<8x128xf32>
      tpu.vector_store %arg5[%c0_16, %c0_17], %18 {strides = array<i32>} : memref<8x128xf32, #tpu.memory_space<vmem>>, vector<8x128xf32>,
    } else {
    }
    %c0 = arith.constant 0 : index
    %c0_1 = arith.constant 0 : index
    %3 = vector.load %arg2[%c0, %c0_1] : memref<256x384xbf16, #tpu.memory_space<vmem>>, vector<256x384xbf16>
    %c0_2 = arith.constant 0 : index
    %c0_3 = arith.constant 0 : index
    %4 = vector.load %arg3[%c0_2, %c0_3] : memref<384x128xbf16, #tpu.memory_space<vmem>>, vector<384x128xbf16>
    %cst = arith.constant dense<0.000000e+00> : vector<256x128xf32>
    %5 = tpu.matmul %3, %4, %cst {dimension_numbers = #tpu.dot_dimension_numbers<[1], [0], [0], [1], [0, 0, 1, 1], [], []>} : vector<256x384xbf16>, vector<384x128xbf16>, vector<256x128xf32> -> vector<256x128xf32>
    %c0_4 = arith.constant 0 : index
    %c0_5 = arith.constant 0 : index
    %6 = vector.load %arg4[%c0_4, %c0_5] : memref<256x128xf32, #tpu.memory_space<vmem>>, vector<256x128xf32>
    tpu.vector_store %arg4[%c0_4, %c0_5], %5 {strides = array<i32>} : memref<256x128xf32, #tpu.memory_space<vmem>>, vector<256x128xf32>,
    %c0_6 = arith.constant 0 : index
    %c0_7 = arith.constant 0 : index
    %7 = vector.load %arg5[%c0_6, %c0_7] : memref<8x128xf32, #tpu.memory_space<vmem>>, vector<1x128xf32>
    %cst_8 = arith.constant dense<0.000000e+00> : vector<128xf32>
    %8 = vector.multi_reduction <add>, %5, %cst_8 [0] : vector<256x128xf32> to vector<128xf32>
    %9 = vector.shape_cast %8 : vector<128xf32> to vector<1x128xf32>
    %10 = arith.addf %7, %9 : vector<1x128xf32>
    %c0_9 = arith.constant 0 : index
    %c0_10 = arith.constant 0 : index
    %11 = vector.load %arg5[%c0_9, %c0_10] : memref<8x128xf32, #tpu.memory_space<vmem>>, vector<1x128xf32>
    tpu.vector_store %arg5[%c0_9, %c0_10], %10 {strides = array<i32>} : memref<8x128xf32, #tpu.memory_space<vmem>>, vector<1x128xf32>,
    %c1 = arith.constant 1 : index
    %c0_11 = arith.constant 0 : index
    %12 = vector.load %arg5[%c1, %c0_11] : memref<8x128xf32, #tpu.memory_space<vmem>>, vector<1x128xf32>
    %13 = arith.mulf %5, %5 : vector<256x128xf32>
    %cst_12 = arith.constant dense<0.000000e+00> : vector<128xf32>
    %14 = vector.multi_reduction <add>, %13, %cst_12 [0] : vector<256x128xf32> to vector<128xf32>
    %15 = vector.shape_cast %14 : vector<128xf32> to vector<1x128xf32>
    %16 = arith.addf %12, %15 : vector<1x128xf32>
    %c1_13 = arith.constant 1 : index
    %c0_14 = arith.constant 0 : index
    %17 = vector.load %arg5[%c1_13, %c0_14] : memref<8x128xf32, #tpu.memory_space<vmem>>, vector<1x128xf32>
    tpu.vector_store %arg5[%c1_13, %c0_14], %16 {strides = array<i32>} : memref<8x128xf32, #tpu.memory_space<vmem>>, vector<1x128xf32>,
    return
  }
  func.func @transform_0(%arg0: i32, %arg1: i32) -> (i32, i32) {
    %c0_i32 = arith.constant 0 : i32
    %c0_i32_0 = arith.constant 0 : i32
    return %arg1, %c0_i32 : i32, i32
  }
  func.func @transform_1(%arg0: i32, %arg1: i32) -> (i32, i32) {
    %c0_i32 = arith.constant 0 : i32
    %c0_i32_0 = arith.constant 0 : i32
    return %c0_i32, %arg0 : i32, i32
  }
  func.func @transform_2(%arg0: i32, %arg1: i32) -> (i32, i32) {
    %c0_i32 = arith.constant 0 : i32
    return %arg1, %arg0 : i32, i32
  }
  func.func @transform_3(%arg0: i32, %arg1: i32) -> (i32, i32) {
    %c0_i32 = arith.constant 0 : i32
    %c0_i32_0 = arith.constant 0 : i32
    return %c0_i32, %arg0 : i32, i32
  }
}

</mosaic_0001>

<bundles_post_ra>
// kernel: tile.27
= control target key start
LH: loop header
LB: loop body
LE: loop exit
PB: predicated region body
PF: predicated region fallthrough
CT: control target
= control target key end

     0   :  { %s28_s0 = inlined_call_operand.vmem [shape: f32[32], index: 0, kind: input, shape index: {}]   ;;  %s29_s1 = inlined_call_operand.vmem [shape: f32[16,32], index: 1, kind: output, shape index: {}]  }
   0x1   :  { %v4_v0 = vld [vmem:[%s28_s0] ss:$0 sm:$0xff] }
   0x2   :  { %5 = vst [vmem:[%s29_s1] sm:$0xff] %v4_v0  ;;  %8 = vst [vmem:[%s29_s1 + $0x8] sm:$0xff] %v4_v0 }

// kernel: tile.29
= control target key start
LH: loop header
LB: loop body
LE: loop exit
PB: predicated region body
PF: predicated region fallthrough
CT: control target
= control target key end

     0   :  { %s57_s8 = smov 96   ;;  %vm3_vm0 = vcmask 261120   ;;  %s59_s15 = smov 64   ;;  %vm9_vm1 = vcmask 1048320   ;;  %vm15_vm2 = vcmask 785920   ;;  %vm21_vm3 = vcmask 523520   ;;  %s94_s0 = inlined_call_operand.vmem [shape: f32[16,32], index: 0, kind: input, shape index: {}]   ;;  %s95_s1 = inlined_call_operand.vmem [shape: f32[1,512], index: 1, kind: output, shape index: {}]  }
   0x1   :  { %v48_v0 = vld [vmem:[%s94_s0 + $0x3] ss:$4 sm:$0xf]   ;;  %v49_v1 = vld [vmem:[%s94_s0 + $0x2] ss:$4 sm:$0xf]  }
   0x2   :  { %7 = vrot.lane.b32.xlu0 %v48_v0, %s57_s8  ;;  %v50_v2 = vld [vmem:[%s94_s0 + $0x1] ss:$4 sm:$0xf]   ;;  %v2_v3 = vld [vmem:[%s94_s0] ss:$4 sm:$0xf]  }
   0x3   :  { %s58_s0 = smov 32   ;;  %4 = vst.msk [vmem:[#allocation0] ss:$8 sm:$0xf] %vm3_vm0, %v2_v3  }
   0x4   :  { %19 = vrot.lane.b32.xlu1 %v50_v2, %s58_s0 }
   0x6   :  { %13 = vrot.lane.b32.xlu0 %v49_v1, %s59_s15 }
  0x74   :  { %v8_v4 = vpop.permute.xlu0 %7  }
  0x75   :  { %10 = vst.msk [vmem:[#allocation0] ss:$8 sm:$0xf] %vm9_vm1, %v8_v4  }
  0x76   :  { %v20_v5 = vpop.permute.xlu1 %19  }
  0x78   :  { %v14_v6 = vpop.permute.xlu0 %13  }
  0x79   :  { %16 = vst.msk [vmem:[#allocation0] ss:$8 sm:$0xf] %vm15_vm2, %v14_v6  }
  0x7a   :  { %22 = vst.msk [vmem:[#allocation0] ss:$8 sm:$0xf] %vm21_vm3, %v20_v5  }
  0x81   :  { %v26_v7 = vld [vmem:[#allocation0] sm:$0x1]  ;;  %v30_v8 = vld [vmem:[#allocation0 + $0x8] sm:$0x1]  ;;  %v35_v9 = vld [vmem:[#allocation0 + $0x10] sm:$0x1] }
  0x82   :  { %28 = vst [vmem:[%s95_s1] sm:$0x1] %v26_v7  ;;  %51 = vst [vmem:[%s95_s1 + $0x1] sm:$0x1] %v30_v8  ;;  %v41_v10 = vld [vmem:[#allocation0 + $0x18] sm:$0x1] }
  0x83   :  { %52 = vst [vmem:[%s95_s1 + $0x2] sm:$0x1] %v35_v9  ;;  %53 = vst [vmem:[%s95_s1 + $0x3] sm:$0x1] %v41_v10 }

// kernel: double_conv_forward.4
= control target key start
LH: loop header
LB: loop body
LE: loop exit
PB: predicated region body
PF: predicated region fallthrough
CT: control target
= control target key end

     0   :  { %s1063_s12 = smov 0   ;;  %s1065_s13 = smov 0   ;;  %s1265_s0 = inlined_call_operand.vmem [shape: bf16[512,128], index: 0, kind: input, shape index: {}]   ;;  %s1266_s1 = inlined_call_operand.vmem [shape: bf16[128,128], index: 1, kind: input, shape index: {}]   ;;  %s1267_s2 = inlined_call_operand.vmem [shape: f32[512,128], index: 2, kind: output, shape index: {0}]   ;;  %s1268_s3 = inlined_call_operand.vmem [shape: f32[8,128], index: 3, kind: output, shape index: {1}]  }
   0x1   :  { %s1067_s14 = smov 0  }
   0x2 LB: > { %s23_s15 = sadd.s32 1, %s1036_s13  ;;  %p848_p0 = scmp.ge.s32.totalorder %s1040_s14, 1  ;;  %s1040_s14 = sphi %s1067_s14, %s14_s14   ;;  %s1036_s13 = sphi %s1065_s13, %s1270_s13   ;;  %s1032_s12 = sphi %s1063_s12, %s1269_s12  }
   0x3   : > { %p24_p1 = scmp.ge.s32.totalorder %s23_s15, 2  ;;  %p164_p2 = scmp.lt.s32.totalorder %s1040_s14, 3 }
   0x5   : > { %s1272_s15 = smov (%p24_p1, %s23_s15), 0  ;;  %p165_p3 = pnand %p848_p0, %p164_p2 }
   0x6   : > { %s849_s16 = sshll.u32 (!%p165_p3), %s1032_s12, 5  ;;  %p853_p5 = scmp.ne.s32.totalorder (!%p165_p3), %s1032_s12, 0 }
   0x7   : > { %168 = sbr.rel (%p165_p3) target bundleno = 348 (0x15c), region = 28  ;;  %p200_p4 = scmp.lt.s32.totalorder (!%p165_p3), %s849_s16, 63 }
   0xe   : > { %s1274_s16 = smov (!%p200_p4, %s849_s16), 63  ;;  %226 = sbr.rel (%p853_p5) target bundleno = 21 (0x15), region = 32 }
   0xf   : > { %s850_s17 = sshll.u32 %s1274_s16, 2  ;;  %s852_s18 = sshll.u32 %s1274_s16, 3  ;;  %v1042_v0 = vmov (!%p853_p5), 0.0  }
  0x10   : > { %s1084_s21 = scalar_lea.vmem %s1265_s0, %s850_s17  ;;  %s1089_s24 = scalar_lea.vmem %s1267_s2, %s852_s18  ;;  %227 = vst [vmem:[%s1268_s3] sm:$0xff] (!%p853_p5), %v1042_v0 }
  0x15 PF: > { %v994_v1 = vld [vmem:[%s1266_s1] sm:$0xff]   ;;  %v995_v2 = vld [vmem:[%s1266_s1 + $0x8] sm:$0xff]   ;;  %v996_v3 = vld [vmem:[%s1266_s1 + $0x10] sm:$0xff]  }
  0x16   : > { %905 = vmatprep.subr.bf16.mxu0 %v994_v1  ;;  %953 = vmatprep.subr.bf16.mxu1 %v994_v1  ;;  %v997_v4 = vld [vmem:[%s1266_s1 + $0x18] sm:$0xff]   ;;  %v1002_v5 = vld [vmem:[%s1084_s21] sm:$0xff]   ;;  %v999_v7 = vld [vmem:[%s1266_s1 + $0x28] sm:$0xff]  }
  0x17   : > { %906 = vmatpush3.bf16.msra.mxu0 %v994_v1  ;;  %961 = vmatpush3.bf16.msra.mxu1 %v994_v1  ;;  %v998_v6 = vld [vmem:[%s1266_s1 + $0x20] sm:$0xff]   ;;  %v1000_v9 = vld [vmem:[%s1266_s1 + $0x30] sm:$0xff]   ;;  %v1001_v10 = vld [vmem:[%s1266_s1 + $0x38] sm:$0xff]  }
  0x18   : > { %907 = vmatprep.subr.bf16.mxu0 %v995_v2  ;;  %954 = vmatprep.subr.bf16.mxu1 %v995_v2  ;;  %v1010_v8 = vld [vmem:[%s1084_s21 + $0x40] sm:$0xff]   ;;  %v1003_v11 = vld [vmem:[%s1084_s21 + $0x8] sm:$0xff]   ;;  %v1004_v13 = vld [vmem:[%s1084_s21 + $0x10] sm:$0xff]  }
  0x19   : > { %921 = vmatprep.mubr.bf16.mxu0 %v1002_v5  ;;  %937 = vmatprep.mubr.bf16.mxu1 %v1010_v8  ;;  %v1011_v12 = vld [vmem:[%s1084_s21 + $0x48] sm:$0xff]   ;;  %v1012_v14 = vld [vmem:[%s1084_s21 + $0x50] sm:$0xff]   ;;  %v1005_v15 = vld [vmem:[%s1084_s21 + $0x18] sm:$0xff]  }
  0x1a   : > { %v1013_v16 = vld [vmem:[%s1084_s21 + $0x58] sm:$0xff]   ;;  %v1006_v17 = vld [vmem:[%s1084_s21 + $0x20] sm:$0xff]   ;;  %v1007_v19 = vld [vmem:[%s1084_s21 + $0x28] sm:$0xff]  }
  0x1b   : > { %908 = vmatpush3.bf16.msra.mxu0 %v995_v2  ;;  %962 = vmatpush3.bf16.msra.mxu1 %v995_v2  ;;  %v1014_v18 = vld [vmem:[%s1084_s21 + $0x60] sm:$0xff]   ;;  %v1015_v20 = vld [vmem:[%s1084_s21 + $0x68] sm:$0xff]   ;;  %v1008_v21 = vld [vmem:[%s1084_s21 + $0x30] sm:$0xff]  }
  0x1c   : > { %909 = vmatprep.subr.bf16.mxu0 %v996_v3  ;;  %955 = vmatprep.subr.bf16.mxu1 %v996_v3  ;;  %v1016_v22 = vld [vmem:[%s1084_s21 + $0x70] sm:$0xff]   ;;  %v1009_v23 = vld [vmem:[%s1084_s21 + $0x38] sm:$0xff]  }
  0x1d   : > { %v1017_v24 = vld [vmem:[%s1084_s21 + $0x78] sm:$0xff]  }
  0x1f   : > { %910 = vmatpush3.bf16.msra.mxu0 %v996_v3  ;;  %963 = vmatpush3.bf16.msra.mxu1 %v996_v3 }
  0x20   : > { %911 = vmatprep.subr.bf16.mxu0 %v997_v4  ;;  %956 = vmatprep.subr.bf16.mxu1 %v997_v4 }
  0x23   : > { %912 = vmatpush3.bf16.msra.mxu0 %v997_v4  ;;  %964 = vmatpush3.bf16.msra.mxu1 %v997_v4 }
  0x24   : > { %913 = vmatprep.subr.bf16.mxu0 %v998_v6  ;;  %957 = vmatprep.subr.bf16.mxu1 %v998_v6 }
  0x27   : > { %914 = vmatpush3.bf16.msra.mxu0 %v998_v6  ;;  %965 = vmatpush3.bf16.msra.mxu1 %v998_v6 }
  0x28   : > { %915 = vmatprep.subr.bf16.mxu0 %v999_v7  ;;  %958 = vmatprep.subr.bf16.mxu1 %v999_v7 }
  0x2b   : > { %916 = vmatpush3.bf16.msra.mxu0 %v999_v7  ;;  %966 = vmatpush3.bf16.msra.mxu1 %v999_v7 }
  0x2c   : > { %917 = vmatprep.subr.bf16.mxu0 %v1000_v9  ;;  %959 = vmatprep.subr.bf16.mxu1 %v1000_v9 }
  0x2f   : > { %918 = vmatpush3.bf16.msra.mxu0 %v1000_v9  ;;  %967 = vmatpush3.bf16.msra.mxu1 %v1000_v9 }
  0x30   : > { %919 = vmatprep.subr.bf16.mxu0 %v1001_v10  ;;  %960 = vmatprep.subr.bf16.mxu1 %v1001_v10 }
  0x33   : > { %920 = vmatpush3.bf16.msra.mxu0 %v1001_v10  ;;  %968 = vmatpush3.bf16.msra.mxu1 %v1001_v10 }
  0x36   : > { %922 = vmatmul.mubr.bf16.vlgmr.msra.gmra.mrb[0].mxu0 %v1003_v11  ;;  %938 = vmatmul.mubr.bf16.vlgmr.msra.gmra.mrb[0].mxu1 %v1011_v12 }
  0x37   : > { %925 = vmatprep.mubr.bf16.mxu0 %v1004_v13  ;;  %941 = vmatprep.mubr.bf16.mxu1 %v1012_v14 }
  0x3e   : > { %926 = vmatmul.mubr.bf16.gmra.mrb[4].mxu0 %v1005_v15  ;;  %942 = vmatmul.mubr.bf16.gmra.mrb[4].mxu1 %v1013_v16 }
  0x3f   : > { %929 = vmatprep.mubr.bf16.mxu0 %v1006_v17  ;;  %945 = vmatprep.mubr.bf16.mxu1 %v1014_v18 }
  0x46   : > { %930 = vmatmul.mubr.bf16.gmra.mrb[8].mxu0 %v1007_v19  ;;  %946 = vmatmul.mubr.bf16.gmra.mrb[8].mxu1 %v1015_v20 }
  0x47   : > { %933 = vmatprep.mubr.bf16.mxu0 %v1008_v21  ;;  %949 = vmatprep.mubr.bf16.mxu1 %v1016_v22 }
  0x4e   : > { %934 = vmatmul.mubr.bf16.gmra.mrb[12].mxu0 %v1009_v23  ;;  %950 = vmatmul.mubr.bf16.gmra.mrb[12].mxu1 %v1017_v24 }
 0x109   : > { %v923_v25 = vpop.f32.mrb[0].mxu0  ;;  %v1134_v26 = vpop.f32.mrb[0].mxu1 }
 0x10a   : > { %583 = vst [vmem:[%s1089_s24 + $0x10] sm:$0xff] %v923_v25  ;;  %v454_v27 = vpop.f32.mrb[1].mxu0  ;;  %599 = vst [vmem:[%s1089_s24 + $0x90] sm:$0xff] %v1134_v26  ;;  %v1139_v28 = vpop.f32.mrb[1].mxu1  ;;  %v656_v36 = vmul.f32 %v923_v25, %v923_v25 }
 0x10b   : > { %581 = vst [vmem:[%s1089_s24] sm:$0xff] %v454_v27  ;;  %v924_v29 = vpop.f32.mrb[2].mxu0  ;;  %597 = vst [vmem:[%s1089_s24 + $0x80] sm:$0xff] %v1139_v28  ;;  %v1144_v30 = vpop.f32.mrb[2].mxu1  ;;  %v654_v33 = vmul.f32 %v454_v27, %v454_v27 }
 0x10c   : > { %584 = vst [vmem:[%s1089_s24 + $0x18] sm:$0xff] %v924_v29  ;;  %v457_v31 = vpop.f32.mrb[3].mxu0  ;;  %600 = vst [vmem:[%s1089_s24 + $0x98] sm:$0xff] %v1144_v30  ;;  %v1149_v32 = vpop.f32.mrb[3].mxu1  ;;  %v657_v39 = vmul.f32 %v924_v29, %v924_v29 }
 0x10d   : > { %582 = vst [vmem:[%s1089_s24 + $0x8] sm:$0xff] %v457_v31  ;;  %v614_v34 = vadd.f32 %v457_v31, %v454_v27  ;;  %v655_v35 = vmul.f32 %v457_v31, %v457_v31  ;;  %598 = vst [vmem:[%s1089_s24 + $0x88] sm:$0xff] %v1149_v32 }
 0x10f   : > { %v615_v37 = vadd.f32 %v923_v25, %v614_v34  ;;  %v686_v38 = vadd.f32 %v655_v35, %v654_v33 }
 0x111   : > { %v687_v40 = vadd.f32 %v686_v38, %v656_v36  ;;  %v927_v41 = vpop.f32.mrb[4].mxu0  ;;  %v616_v42 = vadd.f32 %v924_v29, %v615_v37  ;;  %v1154_v43 = vpop.f32.mrb[4].mxu1 }
 0x112   : > { %587 = vst [vmem:[%s1089_s24 + $0x30] sm:$0xff] %v927_v41  ;;  %v470_v44 = vpop.f32.mrb[5].mxu0  ;;  %603 = vst [vmem:[%s1089_s24 + $0xb0] sm:$0xff] %v1154_v43  ;;  %v1159_v45 = vpop.f32.mrb[5].mxu1  ;;  %v660_v56 = vmul.f32 %v927_v41, %v927_v41 }
 0x113   : > { %585 = vst [vmem:[%s1089_s24 + $0x20] sm:$0xff] %v470_v44  ;;  %v617_v46 = vadd.f32 %v616_v42, %v470_v44  ;;  %v658_v47 = vmul.f32 %v470_v44, %v470_v44  ;;  %v688_v48 = vadd.f32 %v687_v40, %v657_v39  ;;  %v928_v49 = vpop.f32.mrb[6].mxu0  ;;  %601 = vst [vmem:[%s1089_s24 + $0xa0] sm:$0xff] %v1159_v45  ;;  %v1164_v50 = vpop.f32.mrb[6].mxu1 }
 0x114   : > { %588 = vst [vmem:[%s1089_s24 + $0x38] sm:$0xff] %v928_v49  ;;  %v473_v51 = vpop.f32.mrb[7].mxu0  ;;  %604 = vst [vmem:[%s1089_s24 + $0xb8] sm:$0xff] %v1164_v50  ;;  %v1169_v52 = vpop.f32.mrb[7].mxu1  ;;  %v661_v59 = vmul.f32 %v928_v49, %v928_v49  ;;  %v670_v42 = vmul.f32 %v1139_v28, %v1139_v28 }
 0x115   : > { %v689_v53 = vadd.f32 %v688_v48, %v658_v47  ;;  %586 = vst [vmem:[%s1089_s24 + $0x28] sm:$0xff] %v473_v51  ;;  %v618_v54 = vadd.f32 %v617_v46, %v473_v51  ;;  %v659_v55 = vmul.f32 %v473_v51, %v473_v51  ;;  %602 = vst [vmem:[%s1089_s24 + $0xa8] sm:$0xff] %v1169_v52 }
 0x116   : > { %v672_v51 = vmul.f32 %v1134_v26, %v1134_v26 }
 0x117   : > { %v619_v57 = vadd.f32 %v927_v41, %v618_v54  ;;  %v690_v58 = vadd.f32 %v689_v53, %v659_v55  ;;  %v673_v55 = vmul.f32 %v1144_v30, %v1144_v30 }
 0x119   : > { %v691_v60 = vadd.f32 %v690_v58, %v660_v56  ;;  %v931_v61 = vpop.f32.mrb[8].mxu0  ;;  %v620_v62 = vadd.f32 %v928_v49, %v619_v57  ;;  %v1174_v63 = vpop.f32.mrb[8].mxu1  ;;  %v671_v49 = vmul.f32 %v1149_v32, %v1149_v32 }
 0x11a   : > { %591 = vst [vmem:[%s1089_s24 + $0x50] sm:$0xff] %v931_v61  ;;  %v486_v0 = vpop.f32.mrb[9].mxu0  ;;  %607 = vst [vmem:[%s1089_s24 + $0xd0] sm:$0xff] %v1174_v63  ;;  %v1179_v1 = vpop.f32.mrb[9].mxu1  ;;  %v664_v12 = vmul.f32 %v931_v61, %v931_v61 }
 0x11b   : > { %589 = vst [vmem:[%s1089_s24 + $0x40] sm:$0xff] %v486_v0  ;;  %v621_v2 = vadd.f32 %v620_v62, %v486_v0  ;;  %v662_v3 = vmul.f32 %v486_v0, %v486_v0  ;;  %v692_v4 = vadd.f32 %v691_v60, %v661_v59  ;;  %v932_v5 = vpop.f32.mrb[10].mxu0  ;;  %605 = vst [vmem:[%s1089_s24 + $0xc0] sm:$0xff] %v1179_v1  ;;  %v1184_v6 = vpop.f32.mrb[10].mxu1 }
 0x11c   : > { %592 = vst [vmem:[%s1089_s24 + $0x58] sm:$0xff] %v932_v5  ;;  %v489_v7 = vpop.f32.mrb[11].mxu0  ;;  %608 = vst [vmem:[%s1089_s24 + $0xd8] sm:$0xff] %v1184_v6  ;;  %v1189_v8 = vpop.f32.mrb[11].mxu1  ;;  %v665_v15 = vmul.f32 %v932_v5, %v932_v5 }
 0x11d   : > { %v693_v9 = vadd.f32 %v692_v4, %v662_v3  ;;  %590 = vst [vmem:[%s1089_s24 + $0x48] sm:$0xff] %v489_v7  ;;  %v622_v10 = vadd.f32 %v621_v2, %v489_v7  ;;  %v663_v11 = vmul.f32 %v489_v7, %v489_v7  ;;  %606 = vst [vmem:[%s1089_s24 + $0xc8] sm:$0xff] %v1189_v8 }
 0x11f   : > { %v623_v13 = vadd.f32 %v931_v61, %v622_v10  ;;  %v694_v14 = vadd.f32 %v693_v9, %v663_v11  ;;  %v675_v61 = vmul.f32 %v1169_v52, %v1169_v52  ;;  %v679_v9 = vmul.f32 %v1189_v8, %v1189_v8 }
 0x121   : > { %v695_v16 = vadd.f32 %v694_v14, %v664_v12  ;;  %v935_v17 = vpop.f32.mrb[12].mxu0  ;;  %v624_v18 = vadd.f32 %v932_v5, %v623_v13  ;;  %v1194_v19 = vpop.f32.mrb[12].mxu1 }
 0x122   : > { %595 = vst [vmem:[%s1089_s24 + $0x70] sm:$0xff] %v935_v17  ;;  %v502_v20 = vpop.f32.mrb[13].mxu0  ;;  %611 = vst [vmem:[%s1089_s24 + $0xf0] sm:$0xff] %v1194_v19  ;;  %v566_v21 = vpop.f32.mrb[13].mxu1  ;;  %v668_v36 = vmul.f32 %v935_v17, %v935_v17 }
 0x123   : > { %593 = vst [vmem:[%s1089_s24 + $0x60] sm:$0xff] %v502_v20  ;;  %v625_v22 = vadd.f32 %v624_v18, %v502_v20  ;;  %v666_v23 = vmul.f32 %v502_v20, %v502_v20  ;;  %v696_v24 = vadd.f32 %v695_v16, %v665_v15  ;;  %v936_v25 = vpop.f32.mrb[14].mxu0  ;;  %609 = vst [vmem:[%s1089_s24 + $0xe0] sm:$0xff] %v566_v21  ;;  %v952_v27 = vpop.f32.mrb[14].mxu1 }
 0x124   : > { %596 = vst [vmem:[%s1089_s24 + $0x78] sm:$0xff] %v936_v25  ;;  %v505_v29 = vpop.f32.mrb[15].mxu0  ;;  %612 = vst [vmem:[%s1089_s24 + $0xf8] sm:$0xff] %v952_v27  ;;  %v569_v31 = vpop.f32.mrb[15].mxu1  ;;  %v669_v39 = vmul.f32 %v936_v25, %v936_v25 }
 0x125   : > { %v697_v33 = vadd.f32 %v696_v24, %v666_v23  ;;  %594 = vst [vmem:[%s1089_s24 + $0x68] sm:$0xff] %v505_v29  ;;  %v626_v34 = vadd.f32 %v625_v22, %v505_v29  ;;  %v667_v35 = vmul.f32 %v505_v29, %v505_v29  ;;  %610 = vst [vmem:[%s1089_s24 + $0xe8] sm:$0xff] %v569_v31 }
 0x126   : > { %v683_v18 = vmul.f32 %v569_v31, %v569_v31 }
 0x127   : > { %v627_v37 = vadd.f32 %v935_v17, %v626_v34  ;;  %v698_v38 = vadd.f32 %v697_v33, %v667_v35 }
 0x129   : > { %v699_v40 = vadd.f32 %v698_v38, %v668_v36  ;;  %v628_v41 = vadd.f32 %v936_v25, %v627_v37 }
 0x12b   : > { %v629_v44 = vadd.f32 %v628_v41, %v1139_v28  ;;  %v700_v46 = vadd.f32 %v699_v40, %v669_v39  ;;  %v674_v28 = vmul.f32 %v1159_v45, %v1159_v45 }
 0x12d   : > { %v701_v47 = vadd.f32 %v700_v46, %v670_v42  ;;  %v630_v48 = vadd.f32 %v629_v44, %v1149_v32 }
 0x12f   : > { %v631_v53 = vadd.f32 %v1134_v26, %v630_v48  ;;  %v702_v54 = vadd.f32 %v701_v47, %v671_v49  ;;  %v676_v26 = vmul.f32 %v1154_v43, %v1154_v43 }
 0x131   : > { %v703_v56 = vadd.f32 %v702_v54, %v672_v51  ;;  %v632_v57 = vadd.f32 %v1144_v30, %v631_v53  ;;  %v677_v30 = vmul.f32 %v1164_v50, %v1164_v50 }
 0x133   : > { %v633_v58 = vadd.f32 %v632_v57, %v1159_v45  ;;  %v704_v59 = vadd.f32 %v703_v56, %v673_v55  ;;  %v678_v45 = vmul.f32 %v1179_v1, %v1179_v1 }
 0x135   : > { %v705_v60 = vadd.f32 %v704_v59, %v674_v28  ;;  %v634_v32 = vadd.f32 %v633_v58, %v1169_v52 }
 0x137   : > { %v635_v62 = vadd.f32 %v1154_v43, %v634_v32  ;;  %v706_v0 = vadd.f32 %v705_v60, %v675_v61  ;;  %v680_v43 = vmul.f32 %v1174_v63, %v1174_v63 }
 0x139   : > { %v707_v2 = vadd.f32 %v706_v0, %v676_v26  ;;  %v636_v3 = vadd.f32 %v1164_v50, %v635_v62  ;;  %v681_v50 = vmul.f32 %v1184_v6, %v1184_v6 }
 0x13b   : > { %v637_v4 = vadd.f32 %v636_v3, %v1179_v1  ;;  %v708_v5 = vadd.f32 %v707_v2, %v677_v30  ;;  %v682_v1 = vmul.f32 %v566_v21, %v566_v21 }
 0x13d   : > { %v709_v7 = vadd.f32 %v708_v5, %v678_v45  ;;  %v638_v52 = vadd.f32 %v637_v4, %v1189_v8  ;;  %v684_v8 = vmul.f32 %v1194_v19, %v1194_v19 }
 0x13f   : > { %v639_v10 = vadd.f32 %v1174_v63, %v638_v52  ;;  %v710_v11 = vadd.f32 %v709_v7, %v679_v9  ;;  %v685_v63 = vmul.f32 %v952_v27, %v952_v27 }
 0x141   : > { %v711_v12 = vadd.f32 %v710_v11, %v680_v43  ;;  %v640_v13 = vadd.f32 %v1184_v6, %v639_v10 }
 0x143   : > { %v641_v14 = vadd.f32 %v640_v13, %v566_v21  ;;  %v712_v15 = vadd.f32 %v711_v12, %v681_v50 }
 0x145   : > { %v713_v16 = vadd.f32 %v712_v15, %v682_v1  ;;  %v642_v17 = vadd.f32 %v641_v14, %v569_v31  ;;  %v613_v31 = vld [vmem:[%s1268_s3] sm:$0x1] }
 0x147   : > { %v643_v20 = vadd.f32 %v1194_v19, %v642_v17  ;;  %v714_v22 = vadd.f32 %v713_v16, %v683_v18 }
 0x149   : > { %v644_v23 = vadd.f32 %v952_v27, %v643_v20  ;;  %v715_v24 = vadd.f32 %v714_v22, %v684_v8  ;;  %v653_v27 = vld [vmem:[%s1268_s3 + $0x1] sm:$0x1] }
 0x14b   : > { %v645_v25 = vrot.slane %v644_v23, 4  ;;  %v716_v29 = vadd.f32 %v715_v24, %v685_v63 }
 0x14d   : > { %v646_v33 = vadd.f32 %v645_v25, %v644_v23  ;;  %v717_v34 = vrot.slane %v716_v29, 4 }
 0x14f   : > { %v647_v6 = vrot.slane %v646_v33, 2  ;;  %v718_v35 = vadd.f32 %v717_v34, %v716_v29 }
 0x151   : > { %v648_v21 = vadd.f32 %v647_v6, %v646_v33  ;;  %v719_v36 = vrot.slane %v718_v35, 2 }
 0x153   : > { %v649_v37 = vrot.slane %v648_v21, 1  ;;  %v720_v38 = vadd.f32 %v719_v36, %v718_v35 }
 0x155   : > { %v650_v39 = vadd.f32 %v649_v37, %v648_v21  ;;  %v721_v19 = vrot.slane %v720_v38, 1 }
 0x157   : > { %v651_v40 = vadd.f32 %v650_v39, %v613_v31  ;;  %v722_v41 = vadd.f32 %v721_v19, %v720_v38 }
 0x159   : > { %652 = vst [vmem:[%s1268_s3] sm:$0x1] %v651_v40  ;;  %v723_v42 = vadd.f32 %v722_v41, %v653_v27 }
 0x15b   : > { %724 = vst [vmem:[%s1268_s3 + $0x1] sm:$0x1] %v723_v42 }
 0x15c PF: > { %s14_s14 = sadd.s32 1, %s1040_s14   ;;  %s1269_s12 = smov %s1036_s13 }
 0x15d   : > { %p11_p6 = scmp.ge.s32.totalorder %s14_s14, 4   ;;  %s1270_s13 = smov %s1272_s15 }
 0x15f   :  { %13 = sbr.rel (!%p11_p6) target bundleno = 2 (0x2), region = 77 }

// kernel: double_conv_forward.5
= control target key start
LH: loop header
LB: loop body
LE: loop exit
PB: predicated region body
PF: predicated region fallthrough
CT: control target
= control target key end

     0   :  { %v32_v0 = vlaneseq  ;;  %s344_s1 = inlined_call_operand.vmem [shape: f32[1,512], index: 1, kind: input, shape index: {}]   ;;  %s345_s2 = inlined_call_operand.vmem [shape: f32[1,512], index: 2, kind: input, shape index: {}]   ;;  %s346_s0 = inlined_call_operand.vmem [shape: f32[32,512], index: 0, kind: input, shape index: {}]   ;;  %s347_s3 = inlined_call_operand.vmem [shape: f32[32,512], index: 3, kind: output, shape index: {}]  }
   0x1   :  { %v30_v2 = vld [vmem:[%s344_s1] sm:$0xf]  ;;  %v15_v6 = vld [vmem:[%s346_s0 + $0x8] sm:$0xff]  ;;  %v16_v10 = vld [vmem:[%s346_s0 + $0x10] sm:$0xff] }
   0x2   :  { %v33_v1 = vshrl.u32 %v32_v0, 7  ;;  %v68_v3 = vld [vmem:[%s345_s2] sm:$0xf]  ;;  %v19_v12 = vld [vmem:[%s346_s0 + $0x28] sm:$0xff]  ;;  %v17_v17 = vld [vmem:[%s346_s0 + $0x18] sm:$0xff] }
   0x3   :  { %v14_v4 = vld [vmem:[%s346_s0] sm:$0xff]  ;;  %v20_v18 = vld [vmem:[%s346_s0 + $0x30] sm:$0xff]  ;;  %v21_v19 = vld [vmem:[%s346_s0 + $0x38] sm:$0xff] }
   0x4   :  { %v34_v5 = vsub.s32 0, %v33_v1  ;;  %v38_v7 = vsub.s32 1, %v33_v1  ;;  %v42_v8 = vsub.s32 2, %v33_v1  ;;  %v46_v9 = vsub.s32 3, %v33_v1  ;;  %v18_v11 = vld [vmem:[%s346_s0 + $0x20] sm:$0xff]  ;;  %v23_v48 = vld [vmem:[%s346_s0 + $0x48] sm:$0xff] }
   0x5   :  { %v22_v47 = vld [vmem:[%s346_s0 + $0x40] sm:$0xff]  ;;  %v24_v52 = vld [vmem:[%s346_s0 + $0x50] sm:$0xff]  ;;  %v25_v53 = vld [vmem:[%s346_s0 + $0x58] sm:$0xff] }
   0x6   :  { %v215_v13 = vrot.slane %v30_v2, %v34_v5  ;;  %v217_v14 = vrot.slane %v68_v3, %v34_v5  ;;  %v219_v15 = vrot.slane %v30_v2, %v38_v7  ;;  %v221_v16 = vrot.slane %v68_v3, %v38_v7  ;;  %v26_v54 = vld [vmem:[%s346_s0 + $0x60] sm:$0xff]  ;;  %v27_v57 = vld [vmem:[%s346_s0 + $0x68] sm:$0xff]  ;;  %v28_v62 = vld [vmem:[%s346_s0 + $0x70] sm:$0xff] }
   0x7   :  { %v232_v20 = vrot.slane %v30_v2, %v42_v8  ;;  %v234_v21 = vrot.slane %v68_v3, %v42_v8  ;;  %v236_v22 = vrot.slane %v30_v2, %v46_v9  ;;  %v238_v23 = vrot.slane %v68_v3, %v46_v9 }
   0x8   :  { %v52_v24 = vmul.f32 %v215_v13, %v14_v4  ;;  %v53_v25 = vmul.f32 %v219_v15, %v15_v6  ;;  %v56_v26 = vmul.f32 %v215_v13, %v18_v11  ;;  %v57_v27 = vmul.f32 %v219_v15, %v19_v12  ;;  %v29_v11 = vld [vmem:[%s346_s0 + $0x78] sm:$0xff] }
   0x9   :  { %v54_v28 = vmul.f32 %v232_v20, %v16_v10  ;;  %v55_v29 = vmul.f32 %v236_v22, %v17_v17  ;;  %v58_v30 = vmul.f32 %v232_v20, %v20_v18  ;;  %v59_v31 = vmul.f32 %v236_v22, %v21_v19 }
   0xa   :  { %v90_v32 = vadd.f32 %v217_v14, %v52_v24  ;;  %v91_v33 = vadd.f32 %v221_v16, %v53_v25  ;;  %v94_v34 = vadd.f32 %v217_v14, %v56_v26  ;;  %v95_v35 = vadd.f32 %v221_v16, %v57_v27 }
   0xb   :  { %v92_v36 = vadd.f32 %v234_v21, %v54_v28  ;;  %v93_v37 = vadd.f32 %v238_v23, %v55_v29  ;;  %v96_v38 = vadd.f32 %v234_v21, %v58_v30  ;;  %v97_v39 = vadd.f32 %v238_v23, %v59_v31 }
   0xc   :  { %vm106_vm0 = vcmp.gt.f32.partialorder %v90_v32, 0.0  ;;  %v122_v40 = vmul.f32 0.01, %v90_v32  ;;  %vm107_vm1 = vcmp.gt.f32.partialorder %v91_v33, 0.0  ;;  %v123_v41 = vmul.f32 0.01, %v91_v33 }
   0xd   :  { %vm108_vm2 = vcmp.gt.f32.partialorder %v92_v36, 0.0  ;;  %v124_v42 = vmul.f32 0.01, %v92_v36  ;;  %vm109_vm3 = vcmp.gt.f32.partialorder %v93_v37, 0.0  ;;  %v125_v43 = vmul.f32 0.01, %v93_v37 }
   0xe   :  { %v138_v44 = vsel %vm106_vm0, %v90_v32, %v122_v40  ;;  %v139_v45 = vsel %vm107_vm1, %v91_v33, %v123_v41  ;;  %vm110_vm4 = vcmp.gt.f32.partialorder %v94_v34, 0.0  ;;  %v126_v46 = vmul.f32 0.01, %v94_v34 }
   0xf   :  { %154 = vst [vmem:[%s347_s3] sm:$0xff] %v138_v44  ;;  %155 = vst [vmem:[%s347_s3 + $0x8] sm:$0xff] %v139_v45  ;;  %v140_v49 = vsel %vm108_vm2, %v92_v36, %v124_v42  ;;  %v141_v50 = vsel %vm109_vm3, %v93_v37, %v125_v43  ;;  %vm111_vm5 = vcmp.gt.f32.partialorder %v95_v35, 0.0  ;;  %v127_v51 = vmul.f32 0.01, %v95_v35 }
  0x10   :  { %156 = vst [vmem:[%s347_s3 + $0x10] sm:$0xff] %v140_v49  ;;  %157 = vst [vmem:[%s347_s3 + $0x18] sm:$0xff] %v141_v50  ;;  %v142_v55 = vsel %vm110_vm4, %v94_v34, %v126_v46  ;;  %vm112_vm6 = vcmp.gt.f32.partialorder %v96_v38, 0.0  ;;  %v128_v56 = vmul.f32 0.01, %v96_v38  ;;  %vm113_vm7 = vcmp.gt.f32.partialorder %v97_v39, 0.0 }
  0x11   :  { %158 = vst [vmem:[%s347_s3 + $0x20] sm:$0xff] %v142_v55  ;;  %v143_v58 = vsel %vm111_vm5, %v95_v35, %v127_v51  ;;  %v129_v59 = vmul.f32 0.01, %v97_v39  ;;  %v60_v60 = vmul.f32 %v215_v13, %v22_v47  ;;  %v61_v61 = vmul.f32 %v219_v15, %v23_v48 }
  0x12   :  { %159 = vst [vmem:[%s347_s3 + $0x28] sm:$0xff] %v143_v58  ;;  %v144_v63 = vsel %vm112_vm6, %v96_v38, %v128_v56  ;;  %v62_v0 = vmul.f32 %v232_v20, %v24_v52  ;;  %v63_v1 = vmul.f32 %v236_v22, %v25_v53  ;;  %v64_v2 = vmul.f32 %v215_v13, %v26_v54 }
  0x13   :  { %160 = vst [vmem:[%s347_s3 + $0x30] sm:$0xff] %v144_v63  ;;  %v145_v3 = vsel %vm113_vm7, %v97_v39, %v129_v59  ;;  %v98_v4 = vadd.f32 %v217_v14, %v60_v60  ;;  %v99_v5 = vadd.f32 %v221_v16, %v61_v61  ;;  %v65_v6 = vmul.f32 %v219_v15, %v27_v57 }
  0x14   :  { %161 = vst [vmem:[%s347_s3 + $0x38] sm:$0xff] %v145_v3  ;;  %v100_v7 = vadd.f32 %v234_v21, %v62_v0  ;;  %v101_v8 = vadd.f32 %v238_v23, %v63_v1  ;;  %v102_v9 = vadd.f32 %v217_v14, %v64_v2  ;;  %v66_v10 = vmul.f32 %v232_v20, %v28_v62 }
  0x15   :  { %vm114_vm8 = vcmp.gt.f32.partialorder %v98_v4, 0.0  ;;  %v130_v12 = vmul.f32 0.01, %v98_v4  ;;  %vm115_vm9 = vcmp.gt.f32.partialorder %v99_v5, 0.0  ;;  %v131_v13 = vmul.f32 0.01, %v99_v5 }
  0x16   :  { %vm116_vm10 = vcmp.gt.f32.partialorder %v100_v7, 0.0  ;;  %v132_v15 = vmul.f32 0.01, %v100_v7  ;;  %vm117_vm11 = vcmp.gt.f32.partialorder %v101_v8, 0.0  ;;  %v133_v17 = vmul.f32 0.01, %v101_v8 }
  0x17   :  { %v146_v18 = vsel %vm114_vm8, %v98_v4, %v130_v12  ;;  %v147_v19 = vsel %vm115_vm9, %v99_v5, %v131_v13  ;;  %vm118_vm12 = vcmp.gt.f32.partialorder %v102_v9, 0.0  ;;  %v134_v24 = vmul.f32 0.01, %v102_v9 }
  0x18   :  { %162 = vst [vmem:[%s347_s3 + $0x40] sm:$0xff] %v146_v18  ;;  %163 = vst [vmem:[%s347_s3 + $0x48] sm:$0xff] %v147_v19  ;;  %v148_v14 = vsel %vm116_vm10, %v100_v7, %v132_v15  ;;  %v149_v20 = vsel %vm117_vm11, %v101_v8, %v133_v17  ;;  %v103_v25 = vadd.f32 %v221_v16, %v65_v6 }
  0x19   :  { %v104_v26 = vadd.f32 %v234_v21, %v66_v10  ;;  %164 = vst [vmem:[%s347_s3 + $0x50] sm:$0xff] %v148_v14  ;;  %165 = vst [vmem:[%s347_s3 + $0x58] sm:$0xff] %v149_v20  ;;  %v150_v27 = vsel %vm118_vm12, %v102_v9, %v134_v24  ;;  %v67_v28 = vmul.f32 %v236_v22, %v29_v11 }
  0x1a   :  { %166 = vst [vmem:[%s347_s3 + $0x60] sm:$0xff] %v150_v27  ;;  %vm119_vm13 = vcmp.gt.f32.partialorder %v103_v25, 0.0  ;;  %v135_v29 = vmul.f32 0.01, %v103_v25 }
  0x1b   :  { %vm120_vm14 = vcmp.gt.f32.partialorder %v104_v26, 0.0  ;;  %v136_v16 = vmul.f32 0.01, %v104_v26  ;;  %v105_v21 = vadd.f32 %v238_v23, %v67_v28 }
  0x1c   :  { %v151_v30 = vsel %vm119_vm13, %v103_v25, %v135_v29 }
  0x1d   :  { %v152_v31 = vsel %vm120_vm14, %v104_v26, %v136_v16  ;;  %167 = vst [vmem:[%s347_s3 + $0x68] sm:$0xff] %v151_v30  ;;  %vm121_vm15 = vcmp.gt.f32.partialorder %v105_v21, 0.0  ;;  %v137_v22 = vmul.f32 0.01, %v105_v21 }
  0x1e   :  { %168 = vst [vmem:[%s347_s3 + $0x70] sm:$0xff] %v152_v31 }
  0x1f   :  { %v153_v32 = vsel %vm121_vm15, %v105_v21, %v137_v22 }
  0x20   :  { %169 = vst [vmem:[%s347_s3 + $0x78] sm:$0xff] %v153_v32 }

// kernel: double_conv_forward.6
= control target key start
LH: loop header
LB: loop body
LE: loop exit
PB: predicated region body
PF: predicated region fallthrough
CT: control target
= control target key end

     0   :  { %s1772_s12 = smov 0   ;;  %s1774_s13 = smov 0   ;;  %s2003_s0 = inlined_call_operand.vmem [shape: bf16[512,384], index: 0, kind: input, shape index: {}]   ;;  %s2004_s1 = inlined_call_operand.vmem [shape: bf16[384,128], index: 1, kind: input, shape index: {}]   ;;  %s2005_s2 = inlined_call_operand.vmem [shape: f32[512,128], index: 2, kind: output, shape index: {0}]   ;;  %s2006_s3 = inlined_call_operand.vmem [shape: f32[8,128], index: 3, kind: output, shape index: {1}]  }
   0x1   :  { %s1776_s14 = smov 0  }
   0x2 LB: > { %s23_s15 = sadd.s32 1, %s1745_s13  ;;  %p1332_p0 = scmp.ge.s32.totalorder %s1749_s14, 1  ;;  %s1749_s14 = sphi %s1776_s14, %s14_s14   ;;  %s1745_s13 = sphi %s1774_s13, %s2008_s13   ;;  %s1741_s12 = sphi %s1772_s12, %s2007_s12  }
   0x3   : > { %p24_p1 = scmp.ge.s32.totalorder %s23_s15, 2  ;;  %p165_p2 = scmp.lt.s32.totalorder %s1749_s14, 3 }
   0x5   : > { %s2010_s15 = smov (%p24_p1, %s23_s15), 0  ;;  %p166_p3 = pnand %p1332_p0, %p165_p2 }
   0x6   : > { %s1333_s16 = sshll.u32 (!%p166_p3), %s1741_s12, 5  ;;  %p1337_p5 = scmp.ne.s32.totalorder (!%p166_p3), %s1741_s12, 0 }
   0x7   : > { %169 = sbr.rel (%p166_p3) target bundleno = 396 (0x18c), region = 28  ;;  %p202_p4 = scmp.lt.s32.totalorder (!%p166_p3), %s1333_s16, 63 }
   0xe   : > { %s2012_s16 = smov (!%p202_p4, %s1333_s16), 63  ;;  %229 = sbr.rel (%p1337_p5) target bundleno = 21 (0x15), region = 32 }
   0xf   : > { %s1613_s17 = smul.u32 12, %s2012_s16  ;;  %s1336_s18 = sshll.u32 %s2012_s16, 3  ;;  %v1751_v0 = vmov (!%p1337_p5), 0.0  }
  0x10   : > { %s1793_s21 = scalar_lea.vmem %s2005_s2, %s1336_s18  ;;  %230 = vst [vmem:[%s2006_s3] sm:$0xff] (!%p1337_p5), %v1751_v0 }
  0x11   : > { %s1798_s24 = scalar_lea.vmem %s2003_s0, %s1613_s17 }
  0x15 PF: > { %v1639_v1 = vld [vmem:[%s2004_s1 + $0x40] sm:$0xff]   ;;  %v1641_v3 = vld [vmem:[%s2004_s1 + $0x48] sm:$0xff]   ;;  %v1643_v5 = vld [vmem:[%s2004_s1 + $0x50] sm:$0xff]  }
  0x16   : > { %v1640_v2 = vld [vmem:[%s2004_s1] sm:$0xff]   ;;  %1413 = vmatprep.subr.bf16.mxu0 %v1639_v1  ;;  %1597 = vmatprep.subr.bf16.mxu1 %v1639_v1  ;;  %v1642_v4 = vld [vmem:[%s2004_s1 + $0x8] sm:$0xff]   ;;  %v1644_v6 = vld [vmem:[%s2004_s1 + $0x10] sm:$0xff]  }
  0x17   : > { %1414 = vmatpush3.bf16.msra.mxu0 %v1640_v2  ;;  %1605 = vmatpush3.bf16.msra.mxu1 %v1640_v2  ;;  %v1645_v7 = vld [vmem:[%s2004_s1 + $0x58] sm:$0xff]   ;;  %v1647_v9 = vld [vmem:[%s2004_s1 + $0x60] sm:$0xff]   ;;  %v1649_v11 = vld [vmem:[%s2004_s1 + $0x68] sm:$0xff]  }
  0x18   : > { %1415 = vmatprep.subr.bf16.mxu0 %v1641_v3  ;;  %1598 = vmatprep.subr.bf16.mxu1 %v1641_v3  ;;  %v1646_v8 = vld [vmem:[%s2004_s1 + $0x18] sm:$0xff]   ;;  %v1648_v10 = vld [vmem:[%s2004_s1 + $0x20] sm:$0xff]   ;;  %v1650_v14 = vld [vmem:[%s2004_s1 + $0x28] sm:$0xff]  }
  0x19   : > { %v1657_v12 = vld [vmem:[%s1798_s24 + $0x4] ss:$12 sps:$4 sm:$0xff]   ;;  %v1653_v17 = vld [vmem:[%s2004_s1 + $0x78] sm:$0xff]   ;;  %v1655_v20 = vld [vmem:[%s1798_s24] ss:$12 sps:$4 sm:$0xff]  }
  0x1a   : > { %v1660_v13 = vld [vmem:[%s1798_s24 + $0x124] ss:$12 sps:$4 sm:$0xff]   ;;  %775 = vmatprep.mubr.bf16.mxu0 %v1657_v12  ;;  %v1654_v18 = vld [vmem:[%s2004_s1 + $0x38] sm:$0xff]   ;;  %v1658_v21 = vld [vmem:[%s1798_s24 + $0x120] ss:$12 sps:$4 sm:$0xff]  }
  0x1b   : > { %1416 = vmatpush3.bf16.msra.mxu0 %v1642_v4  ;;  %1606 = vmatpush3.bf16.msra.mxu1 %v1642_v4  ;;  %v1651_v15 = vld [vmem:[%s2004_s1 + $0x70] sm:$0xff]   ;;  %v1661_v19 = vld [vmem:[%s2004_s1 + $0x80] sm:$0xff]   ;;  %v1663_v22 = vld [vmem:[%s1798_s24 + $0x1c] ss:$12 sps:$4 sm:$0xff]  }
  0x1c   : > { %1417 = vmatprep.subr.bf16.mxu0 %v1643_v5  ;;  %1599 = vmatprep.subr.bf16.mxu1 %v1643_v5  ;;  %v1652_v16 = vld [vmem:[%s2004_s1 + $0x30] sm:$0xff]   ;;  %v1662_v23 = vld [vmem:[%s2004_s1 + $0x88] sm:$0xff]   ;;  %v1667_v25 = vld [vmem:[%s1798_s24 + $0x18] ss:$12 sps:$4 sm:$0xff]  }
  0x1d   : > { %871 = vmatprep.mubr.bf16.mxu1 %v1660_v13  ;;  %v1665_v24 = vld [vmem:[%s1798_s24 + $0x13c] ss:$12 sps:$4 sm:$0xff]   ;;  %v1669_v26 = vld [vmem:[%s2004_s1 + $0x90] sm:$0xff]   ;;  %v1668_v27 = vld [vmem:[%s1798_s24 + $0x138] ss:$12 sps:$4 sm:$0xff]  }
  0x1e   : > { %v1670_v28 = vld [vmem:[%s2004_s1 + $0x98] sm:$0xff]   ;;  %v1671_v29 = vld [vmem:[%s1798_s24 + $0x34] ss:$12 sps:$4 sm:$0xff]   ;;  %v1678_v34 = vld [vmem:[%s2004_s1 + $0xa8] sm:$0xff]  }
  0x1f   : > { %1418 = vmatpush3.bf16.msra.mxu0 %v1644_v6  ;;  %1607 = vmatpush3.bf16.msra.mxu1 %v1644_v6  ;;  %v1673_v30 = vld [vmem:[%s1798_s24 + $0x154] ss:$12 sps:$4 sm:$0xff]   ;;  %v1675_v32 = vld [vmem:[%s1798_s24 + $0x30] ss:$12 sps:$4 sm:$0xff]   ;;  %v1679_v35 = vld [vmem:[%s1798_s24 + $0x4c] ss:$12 sps:$4 sm:$0xff]  }
  0x20   : > { %1419 = vmatprep.subr.bf16.mxu0 %v1645_v7  ;;  %1600 = vmatprep.subr.bf16.mxu1 %v1645_v7  ;;  %v1677_v31 = vld [vmem:[%s2004_s1 + $0xa0] sm:$0xff]   ;;  %v1676_v33 = vld [vmem:[%s1798_s24 + $0x150] ss:$12 sps:$4 sm:$0xff]   ;;  %v1681_v36 = vld [vmem:[%s1798_s24 + $0x16c] ss:$12 sps:$4 sm:$0xff]  }
  0x21   : > { %v1685_v37 = vld [vmem:[%s2004_s1 + $0xb0] sm:$0xff]   ;;  %v1686_v41 = vld [vmem:[%s2004_s1 + $0xb8] sm:$0xff]   ;;  %v1690_v43 = vld [vmem:[%s1798_s24 + $0x60] ss:$12 sps:$4 sm:$0xff]  }
  0x22   : > { %v1683_v38 = vld [vmem:[%s1798_s24 + $0x48] ss:$12 sps:$4 sm:$0xff]   ;;  %v1687_v40 = vld [vmem:[%s1798_s24 + $0x64] ss:$12 sps:$4 sm:$0xff]   ;;  %v1691_v44 = vld [vmem:[%s1798_s24 + $0x20] ss:$12 sps:$4 sm:$0xff]  }
  0x23   : > { %1420 = vmatpush3.bf16.msra.mxu0 %v1646_v8  ;;  %1608 = vmatpush3.bf16.msra.mxu1 %v1646_v8  ;;  %v1684_v39 = vld [vmem:[%s1798_s24 + $0x168] ss:$12 sps:$4 sm:$0xff]   ;;  %v1694_v46 = vld [vmem:[%s1798_s24 + $0x38] ss:$12 sps:$4 sm:$0xff]   ;;  %v1696_v48 = vld [vmem:[%s1798_s24 + $0x50] ss:$12 sps:$4 sm:$0xff]  }
  0x24   : > { %1421 = vmatprep.subr.bf16.mxu0 %v1647_v9  ;;  %1601 = vmatprep.subr.bf16.mxu1 %v1647_v9  ;;  %v1689_v42 = vld [vmem:[%s1798_s24 + $0x8] ss:$12 sps:$4 sm:$0xff]   ;;  %v1695_v47 = vld [vmem:[%s1798_s24 + $0x78] ss:$12 sps:$4 sm:$0xff]   ;;  %v1700_v51 = vld [vmem:[%s1798_s24 + $0x90] ss:$12 sps:$4 sm:$0xff]  }
  0x25   : > { %v1692_v45 = vld [vmem:[%s1798_s24 + $0x7c] ss:$12 sps:$4 sm:$0xff]   ;;  %v1697_v49 = vld [vmem:[%s1798_s24 + $0x94] ss:$12 sps:$4 sm:$0xff]   ;;  %v1702_v53 = vld [vmem:[%s1798_s24 + $0xac] ss:$12 sps:$4 sm:$0xff]  }
  0x26   : > { %v1699_v50 = vld [vmem:[%s1798_s24 + $0x68] ss:$12 sps:$4 sm:$0xff]   ;;  %v1701_v52 = vld [vmem:[%s1798_s24 + $0x80] ss:$12 sps:$4 sm:$0xff]   ;;  %v1704_v54 = vld [vmem:[%s1798_s24 + $0x98] ss:$12 sps:$4 sm:$0xff]  }
  0x27   : > { %1422 = vmatpush3.bf16.msra.mxu0 %v1648_v10  ;;  %1609 = vmatpush3.bf16.msra.mxu1 %v1648_v10  ;;  %v1705_v55 = vld [vmem:[%s1798_s24 + $0xa8] ss:$12 sps:$4 sm:$0xff]   ;;  %v1706_v56 = vld [vmem:[%s1798_s24 + $0xb0] ss:$12 sps:$4 sm:$0xff]   ;;  %v1710_v59 = vld [vmem:[%s1798_s24 + $0xc0] ss:$12 sps:$4 sm:$0xff]  }
  0x28   : > { %1423 = vmatprep.subr.bf16.mxu0 %v1649_v11  ;;  %1602 = vmatprep.subr.bf16.mxu1 %v1649_v11  ;;  %v1707_v57 = vld [vmem:[%s1798_s24 + $0xc4] ss:$12 sps:$4 sm:$0xff]   ;;  %v1709_v58 = vld [vmem:[%s1798_s24 + $0xc8] ss:$12 sps:$4 sm:$0xff]   ;;  %v1711_v60 = vld [vmem:[%s1798_s24 + $0xe0] ss:$12 sps:$4 sm:$0xff]  }
  0x29   : > { %v1712_v61 = vld [vmem:[%s1798_s24 + $0xdc] ss:$12 sps:$4 sm:$0xff]   ;;  %v1714_v62 = vld [vmem:[%s1798_s24 + $0xf8] ss:$12 sps:$4 sm:$0xff]   ;;  %v1717_v1 = vld [vmem:[%s1798_s24 + $0xf4] ss:$12 sps:$4 sm:$0xff]  }
  0x2a   : > { %v1715_v63 = vld [vmem:[%s1798_s24 + $0xd8] ss:$12 sps:$4 sm:$0xff]   ;;  %v1716_v0 = vld [vmem:[%s1798_s24 + $0x110] ss:$12 sps:$4 sm:$0xff]   ;;  %v1719_v2 = vld [vmem:[%s1798_s24 + $0x128] ss:$12 sps:$4 sm:$0xff]  }
  0x2b   : > { %1424 = vmatpush3.bf16.msra.mxu0 %v1650_v14  ;;  %1610 = vmatpush3.bf16.msra.mxu1 %v1650_v14  ;;  %v1720_v3 = vld [vmem:[%s1798_s24 + $0xf0] ss:$12 sps:$4 sm:$0xff]   ;;  %v1721_v4 = vld [vmem:[%s1798_s24 + $0x140] ss:$12 sps:$4 sm:$0xff]   ;;  %v1724_v6 = vld [vmem:[%s1798_s24 + $0x158] ss:$12 sps:$4 sm:$0xff]  }
  0x2c   : > { %1425 = vmatprep.subr.bf16.mxu0 %v1651_v15  ;;  %1603 = vmatprep.subr.bf16.mxu1 %v1651_v15  ;;  %v1722_v5 = vld [vmem:[%s1798_s24 + $0x10c] ss:$12 sps:$4 sm:$0xff]   ;;  %v1725_v7 = vld [vmem:[%s1798_s24 + $0x108] ss:$12 sps:$4 sm:$0xff]   ;;  %v1726_v8 = vld [vmem:[%s1798_s24 + $0x170] ss:$12 sps:$4 sm:$0xff]  }
  0x2f   : > { %1426 = vmatpush3.bf16.msra.mxu0 %v1652_v16  ;;  %1611 = vmatpush3.bf16.msra.mxu1 %v1652_v16 }
  0x30   : > { %1427 = vmatprep.subr.bf16.mxu0 %v1653_v17  ;;  %1604 = vmatprep.subr.bf16.mxu1 %v1653_v17 }
  0x33   : > { %1428 = vmatpush3.bf16.msra.mxu0 %v1654_v18  ;;  %1612 = vmatpush3.bf16.msra.mxu1 %v1654_v18 }
  0x34   : > { %1549 = vmatprep.subr.bf16.mxu1 %v1661_v19 }
  0x36   : > { %776 = vmatmul.mubr.bf16.vlgmr.msra.gmra.mrb[0].mxu0 %v1655_v20  ;;  %872 = vmatmul.mubr.bf16.vlgmr.msra.gmra.mrb[0].mxu1 %v1658_v21 }
  0x37   : > { %1550 = vmatpush3.bf16.msra.mxu1 %v1661_v19  ;;  %783 = vmatprep.mubr.bf16.mxu0 %v1663_v22 }
  0x38   : > { %1551 = vmatprep.subr.bf16.mxu1 %v1662_v23  ;;  %879 = vmatprep.mubr.bf16.mxu1 %v1665_v24 }
  0x3b   : > { %1552 = vmatpush3.bf16.msra.mxu1 %v1662_v23 }
  0x3c   : > { %1553 = vmatprep.subr.bf16.mxu1 %v1669_v26 }
  0x3e   : > { %784 = vmatmul.mubr.bf16.gmra.mrb[4].mxu0 %v1667_v25  ;;  %880 = vmatmul.mubr.bf16.gmra.mrb[4].mxu1 %v1668_v27 }
  0x3f   : > { %1554 = vmatpush3.bf16.msra.mxu1 %v1669_v26  ;;  %791 = vmatprep.mubr.bf16.mxu0 %v1671_v29 }
  0x40   : > { %1555 = vmatprep.subr.bf16.mxu1 %v1670_v28  ;;  %887 = vmatprep.mubr.bf16.mxu1 %v1673_v30 }
  0x43   : > { %1556 = vmatpush3.bf16.msra.mxu1 %v1670_v28 }
  0x44   : > { %1557 = vmatprep.subr.bf16.mxu1 %v1677_v31 }
  0x46   : > { %792 = vmatmul.mubr.bf16.gmra.mrb[8].mxu0 %v1675_v32  ;;  %888 = vmatmul.mubr.bf16.gmra.mrb[8].mxu1 %v1676_v33 }
  0x47   : > { %1558 = vmatpush3.bf16.msra.mxu1 %v1677_v31  ;;  %799 = vmatprep.mubr.bf16.mxu0 %v1679_v35 }
  0x48   : > { %1559 = vmatprep.subr.bf16.mxu1 %v1678_v34  ;;  %895 = vmatprep.mubr.bf16.mxu1 %v1681_v36 }
  0x4b   : > { %1560 = vmatpush3.bf16.msra.mxu1 %v1678_v34 }
  0x4c   : > { %1561 = vmatprep.subr.bf16.mxu1 %v1685_v37 }
  0x4e   : > { %800 = vmatmul.mubr.bf16.gmra.mrb[12].mxu0 %v1683_v38  ;;  %896 = vmatmul.mubr.bf16.gmra.mrb[12].mxu1 %v1684_v39 }
  0x4f   : > { %1562 = vmatpush3.bf16.msra.mxu1 %v1685_v37  ;;  %807 = vmatprep.mubr.bf16.mxu0 %v1687_v40 }
  0x50   : > { %1563 = vmatprep.subr.bf16.mxu1 %v1686_v41  ;;  %1565 = vmatprep.mubr.bf16.mxu1 %v1689_v42 }
  0x53   : > { %1564 = vmatpush3.bf16.msra.mxu1 %v1686_v41 }
  0x56   : > { %808 = vmatmul.mubr.bf16.gmra.mrb[16].mxu0 %v1690_v43  ;;  %1566 = vmatmul.mubr.bf16.vlgmr.msra.gmra.mrb[16].mxu1 %v1691_v44 }
  0x57   : > { %815 = vmatprep.mubr.bf16.mxu0 %v1692_v45  ;;  %1569 = vmatprep.mubr.bf16.mxu1 %v1694_v46 }
  0x5e   : > { %816 = vmatmul.mubr.bf16.gmra.mrb[20].mxu0 %v1695_v47  ;;  %1570 = vmatmul.mubr.bf16.gmra.mrb[20].mxu1 %v1696_v48 }
  0x5f   : > { %823 = vmatprep.mubr.bf16.mxu0 %v1697_v49  ;;  %1573 = vmatprep.mubr.bf16.mxu1 %v1699_v50 }
  0x66   : > { %824 = vmatmul.mubr.bf16.gmra.mrb[24].mxu0 %v1700_v51  ;;  %1574 = vmatmul.mubr.bf16.gmra.mrb[24].mxu1 %v1701_v52 }
  0x67   : > { %831 = vmatprep.mubr.bf16.mxu0 %v1702_v53  ;;  %1577 = vmatprep.mubr.bf16.mxu1 %v1704_v54 }
  0x6e   : > { %832 = vmatmul.mubr.bf16.gmra.mrb[28].mxu0 %v1705_v55  ;;  %1578 = vmatmul.mubr.bf16.gmra.mrb[28].mxu1 %v1706_v56 }
  0x6f   : > { %839 = vmatprep.mubr.bf16.mxu0 %v1707_v57  ;;  %1581 = vmatprep.mubr.bf16.mxu1 %v1709_v58 }
  0x76   : > { %840 = vmatmul.mubr.bf16.gmra.mrb[32].mxu0 %v1710_v59  ;;  %1582 = vmatmul.mubr.bf16.gmra.mrb[32].mxu1 %v1711_v60 }
  0x77   : > { %847 = vmatprep.mubr.bf16.mxu0 %v1712_v61  ;;  %1585 = vmatprep.mubr.bf16.mxu1 %v1714_v62 }
  0x7e   : > { %848 = vmatmul.mubr.bf16.gmra.mrb[36].mxu0 %v1715_v63  ;;  %1586 = vmatmul.mubr.bf16.gmra.mrb[36].mxu1 %v1716_v0 }
  0x7f   : > { %855 = vmatprep.mubr.bf16.mxu0 %v1717_v1  ;;  %1589 = vmatprep.mubr.bf16.mxu1 %v1719_v2 }
  0x86   : > { %856 = vmatmul.mubr.bf16.gmra.mrb[40].mxu0 %v1720_v3  ;;  %1590 = vmatmul.mubr.bf16.gmra.mrb[40].mxu1 %v1721_v4 }
  0x87   : > { %863 = vmatprep.mubr.bf16.mxu0 %v1722_v5  ;;  %1593 = vmatprep.mubr.bf16.mxu1 %v1724_v6 }
  0x8e   : > { %864 = vmatmul.mubr.bf16.gmra.mrb[44].mxu0 %v1725_v7  ;;  %1594 = vmatmul.mubr.bf16.gmra.mrb[44].mxu1 %v1726_v8 }
 0x109   : > { %v1429_v9 = vpop.f32.mrb[0].mxu0  ;;  %v1501_v10 = vpop.f32.mrb[0].mxu1 }
 0x10a   : > { %v1430_v11 = vpop.f32.mrb[1].mxu0  ;;  %v1502_v12 = vpop.f32.mrb[1].mxu1 }
 0x10b   : > { %v1431_v13 = vadd.f32 %v1430_v11, %v1429_v9  ;;  %v1432_v14 = vpop.f32.mrb[2].mxu0  ;;  %v1923_v15 = vadd.f32 %v1502_v12, %v1501_v10  ;;  %v1504_v16 = vpop.f32.mrb[2].mxu1 }
 0x10c   : > { %v1433_v17 = vpop.f32.mrb[3].mxu0  ;;  %v1505_v18 = vpop.f32.mrb[3].mxu1 }
 0x10d   : > { %v1434_v19 = vadd.f32 %v1433_v17, %v1432_v14  ;;  %v1925_v20 = vadd.f32 %v1505_v18, %v1504_v16 }
 0x111   : > { %v1435_v21 = vpop.f32.mrb[4].mxu0  ;;  %v1507_v22 = vpop.f32.mrb[4].mxu1 }
 0x112   : > { %v1436_v23 = vpop.f32.mrb[5].mxu0  ;;  %v1508_v24 = vpop.f32.mrb[5].mxu1 }
 0x113   : > { %v1437_v25 = vadd.f32 %v1436_v23, %v1435_v21  ;;  %v1438_v26 = vpop.f32.mrb[6].mxu0  ;;  %v1927_v27 = vadd.f32 %v1508_v24, %v1507_v22  ;;  %v1510_v28 = vpop.f32.mrb[6].mxu1 }
 0x114   : > { %v1439_v29 = vpop.f32.mrb[7].mxu0  ;;  %v1511_v30 = vpop.f32.mrb[7].mxu1 }
 0x115   : > { %v1440_v31 = vadd.f32 %v1439_v29, %v1438_v26  ;;  %v1929_v32 = vadd.f32 %v1511_v30, %v1510_v28 }
 0x119   : > { %v1441_v33 = vpop.f32.mrb[8].mxu0  ;;  %v1513_v34 = vpop.f32.mrb[8].mxu1 }
 0x11a   : > { %v1442_v35 = vpop.f32.mrb[9].mxu0  ;;  %v1514_v36 = vpop.f32.mrb[9].mxu1 }
 0x11b   : > { %v1443_v37 = vadd.f32 %v1442_v35, %v1441_v33  ;;  %v1444_v38 = vpop.f32.mrb[10].mxu0  ;;  %v1931_v39 = vadd.f32 %v1514_v36, %v1513_v34  ;;  %v1516_v40 = vpop.f32.mrb[10].mxu1 }
 0x11c   : > { %v1445_v41 = vpop.f32.mrb[11].mxu0  ;;  %v1517_v42 = vpop.f32.mrb[11].mxu1 }
 0x11d   : > { %v1446_v43 = vadd.f32 %v1445_v41, %v1444_v38  ;;  %v1933_v44 = vadd.f32 %v1517_v42, %v1516_v40 }
 0x121   : > { %v1447_v45 = vpop.f32.mrb[12].mxu0  ;;  %v1519_v46 = vpop.f32.mrb[12].mxu1 }
 0x122   : > { %v1448_v47 = vpop.f32.mrb[13].mxu0  ;;  %v1520_v48 = vpop.f32.mrb[13].mxu1 }
 0x123   : > { %v1449_v49 = vadd.f32 %v1448_v47, %v1447_v45  ;;  %v1450_v50 = vpop.f32.mrb[14].mxu0  ;;  %v1935_v51 = vadd.f32 %v1520_v48, %v1519_v46  ;;  %v1522_v52 = vpop.f32.mrb[14].mxu1 }
 0x124   : > { %v1451_v53 = vpop.f32.mrb[15].mxu0  ;;  %v1523_v54 = vpop.f32.mrb[15].mxu1 }
 0x125   : > { %v1452_v55 = vadd.f32 %v1451_v53, %v1450_v50  ;;  %v1937_v56 = vadd.f32 %v1523_v54, %v1522_v52 }
 0x129   : > { %v1453_v57 = vpop.f32.mrb[16].mxu0  ;;  %v1567_v58 = vpop.f32.mrb[16].mxu1 }
 0x12a   : > { %v947_v59 = vadd.f32 %v1567_v58, %v1437_v25  ;;  %v1454_v60 = vpop.f32.mrb[17].mxu0  ;;  %v938_v61 = vpop.f32.mrb[17].mxu1 }
 0x12b   : > { %v1455_v62 = vadd.f32 %v1454_v60, %v1453_v57  ;;  %v939_v63 = vadd.f32 %v1431_v13, %v938_v61  ;;  %v1456_v0 = vpop.f32.mrb[18].mxu0  ;;  %v1568_v1 = vpop.f32.mrb[18].mxu1 }
 0x12c   : > { %1067 = vst [vmem:[%s1793_s21 + $0x10] sm:$0xff] %v947_v59  ;;  %v950_v2 = vadd.f32 %v1568_v1, %v1440_v31  ;;  %v1457_v3 = vpop.f32.mrb[19].mxu0  ;;  %v941_v4 = vpop.f32.mrb[19].mxu1  ;;  %v1140_v10 = vmul.f32 %v947_v59, %v947_v59 }
 0x12d   : > { %1065 = vst [vmem:[%s1793_s21] sm:$0xff] %v939_v63  ;;  %v1458_v5 = vadd.f32 %v1457_v3, %v1456_v0  ;;  %v942_v6 = vadd.f32 %v1434_v19, %v941_v4  ;;  %v1138_v7 = vmul.f32 %v939_v63, %v939_v63 }
 0x12e   : > { %1068 = vst [vmem:[%s1793_s21 + $0x18] sm:$0xff] %v950_v2  ;;  %v1141_v16 = vmul.f32 %v950_v2, %v950_v2 }
 0x12f   : > { %1066 = vst [vmem:[%s1793_s21 + $0x8] sm:$0xff] %v942_v6  ;;  %v1098_v8 = vadd.f32 %v942_v6, %v939_v63  ;;  %v1139_v9 = vmul.f32 %v942_v6, %v942_v6 }
 0x131   : > { %v1099_v11 = vadd.f32 %v1098_v8, %v947_v59  ;;  %v1170_v12 = vadd.f32 %v1139_v9, %v1138_v7  ;;  %v1459_v14 = vpop.f32.mrb[20].mxu0  ;;  %v1571_v13 = vpop.f32.mrb[20].mxu1 }
 0x132   : > { %v963_v17 = vadd.f32 %v1571_v13, %v1449_v49  ;;  %v1460_v18 = vpop.f32.mrb[21].mxu0  ;;  %v954_v21 = vpop.f32.mrb[21].mxu1 }
 0x133   : > { %v1171_v22 = vadd.f32 %v1170_v12, %v1140_v10  ;;  %v1461_v23 = vadd.f32 %v1460_v18, %v1459_v14  ;;  %v955_v19 = vadd.f32 %v1443_v37, %v954_v21  ;;  %v1100_v24 = vadd.f32 %v1099_v11, %v950_v2  ;;  %v1462_v25 = vpop.f32.mrb[22].mxu0  ;;  %v1572_v26 = vpop.f32.mrb[22].mxu1 }
 0x134   : > { %1071 = vst [vmem:[%s1793_s21 + $0x30] sm:$0xff] %v963_v17  ;;  %v966_v28 = vadd.f32 %v1572_v26, %v1452_v55  ;;  %v1463_v29 = vpop.f32.mrb[23].mxu0  ;;  %v957_v30 = vpop.f32.mrb[23].mxu1  ;;  %v1144_v45 = vmul.f32 %v963_v17, %v963_v17 }
 0x135   : > { %1069 = vst [vmem:[%s1793_s21 + $0x20] sm:$0xff] %v955_v19  ;;  %v1101_v31 = vadd.f32 %v1100_v24, %v955_v19  ;;  %v1142_v33 = vmul.f32 %v955_v19, %v955_v19  ;;  %v1172_v34 = vadd.f32 %v1171_v22, %v1141_v16  ;;  %v1464_v35 = vadd.f32 %v1463_v29, %v1462_v25 }
 0x136   : > { %1072 = vst [vmem:[%s1793_s21 + $0x38] sm:$0xff] %v966_v28  ;;  %v958_v36 = vadd.f32 %v1446_v43, %v957_v30  ;;  %v1145_v55 = vmul.f32 %v966_v28, %v966_v28 }
 0x137   : > { %v1173_v38 = vadd.f32 %v1172_v34, %v1142_v33 }
 0x138   : > { %1070 = vst [vmem:[%s1793_s21 + $0x28] sm:$0xff] %v958_v36  ;;  %v1102_v40 = vadd.f32 %v1101_v31, %v958_v36  ;;  %v1143_v37 = vmul.f32 %v958_v36, %v958_v36 }
 0x139   : > { %v1465_v41 = vpop.f32.mrb[24].mxu0  ;;  %v1575_v42 = vpop.f32.mrb[24].mxu1 }
 0x13a   : > { %v1103_v46 = vadd.f32 %v1102_v40, %v963_v17  ;;  %v1174_v47 = vadd.f32 %v1173_v38, %v1143_v37  ;;  %v979_v48 = vadd.f32 %v1575_v42, %v1461_v23  ;;  %v1466_v49 = vpop.f32.mrb[25].mxu0  ;;  %v970_v50 = vpop.f32.mrb[25].mxu1 }
 0x13b   : > { %v1467_v52 = vadd.f32 %v1466_v49, %v1465_v41  ;;  %v971_v53 = vadd.f32 %v1455_v62, %v970_v50  ;;  %v1468_v54 = vpop.f32.mrb[26].mxu0  ;;  %v1576_v43 = vpop.f32.mrb[26].mxu1 }
 0x13c   : > { %v1175_v57 = vadd.f32 %v1174_v47, %v1144_v45  ;;  %1075 = vst [vmem:[%s1793_s21 + $0x50] sm:$0xff] %v979_v48  ;;  %v1104_v58 = vadd.f32 %v1103_v46, %v966_v28  ;;  %v982_v59 = vadd.f32 %v1576_v43, %v1464_v35  ;;  %v1469_v60 = vpop.f32.mrb[27].mxu0  ;;  %v973_v61 = vpop.f32.mrb[27].mxu1  ;;  %v1148_v9 = vmul.f32 %v979_v48, %v979_v48 }
 0x13d   : > { %1073 = vst [vmem:[%s1793_s21 + $0x40] sm:$0xff] %v971_v53  ;;  %v1146_v63 = vmul.f32 %v971_v53, %v971_v53  ;;  %v1470_v0 = vadd.f32 %v1469_v60, %v1468_v54  ;;  %v974_v1 = vadd.f32 %v1458_v5, %v973_v61 }
 0x13e   : > { %v1105_v2 = vadd.f32 %v1104_v58, %v971_v53  ;;  %v1176_v3 = vadd.f32 %v1175_v57, %v1145_v55  ;;  %1076 = vst [vmem:[%s1793_s21 + $0x58] sm:$0xff] %v982_v59  ;;  %v1149_v18 = vmul.f32 %v982_v59, %v982_v59 }
 0x13f   : > { %1074 = vst [vmem:[%s1793_s21 + $0x48] sm:$0xff] %v974_v1  ;;  %v1147_v62 = vmul.f32 %v974_v1, %v974_v1 }
 0x140   : > { %v1177_v4 = vadd.f32 %v1176_v3, %v1146_v63  ;;  %v1106_v6 = vadd.f32 %v1105_v2, %v974_v1 }
 0x141   : > { %v1471_v7 = vpop.f32.mrb[28].mxu0  ;;  %v1579_v8 = vpop.f32.mrb[28].mxu1 }
 0x142   : > { %v1107_v10 = vadd.f32 %v1106_v6, %v979_v48  ;;  %v1178_v11 = vadd.f32 %v1177_v4, %v1147_v62  ;;  %v1472_v12 = vpop.f32.mrb[29].mxu0  ;;  %v986_v14 = vpop.f32.mrb[29].mxu1 }
 0x143   : > { %v1473_v13 = vadd.f32 %v1472_v12, %v1471_v7  ;;  %v987_v16 = vadd.f32 %v1467_v52, %v986_v14  ;;  %v1474_v17 = vpop.f32.mrb[30].mxu0  ;;  %v1580_v5 = vpop.f32.mrb[30].mxu1 }
 0x144   : > { %v1179_v21 = vadd.f32 %v1178_v11, %v1148_v9  ;;  %v1108_v22 = vadd.f32 %v1107_v10, %v982_v59  ;;  %v1475_v23 = vpop.f32.mrb[31].mxu0  ;;  %v989_v19 = vpop.f32.mrb[31].mxu1 }
 0x145   : > { %v995_v24 = vadd.f32 %v1579_v8, %v1473_v13  ;;  %1077 = vst [vmem:[%s1793_s21 + $0x60] sm:$0xff] %v987_v16  ;;  %v1150_v25 = vmul.f32 %v987_v16, %v987_v16  ;;  %v1476_v26 = vadd.f32 %v1475_v23, %v1474_v17  ;;  %v990_v28 = vadd.f32 %v1470_v0, %v989_v19 }
 0x146   : > { %v1109_v29 = vadd.f32 %v1108_v22, %v987_v16  ;;  %v1180_v30 = vadd.f32 %v1179_v21, %v1149_v18 }
 0x147   : > { %1079 = vst [vmem:[%s1793_s21 + $0x70] sm:$0xff] %v995_v24  ;;  %v998_v31 = vadd.f32 %v1580_v5, %v1476_v26  ;;  %1078 = vst [vmem:[%s1793_s21 + $0x68] sm:$0xff] %v990_v28  ;;  %v1151_v33 = vmul.f32 %v990_v28, %v990_v28  ;;  %v1152_v40 = vmul.f32 %v995_v24, %v995_v24 }
 0x148   : > { %v1181_v34 = vadd.f32 %v1180_v30, %v1150_v25  ;;  %v1110_v35 = vadd.f32 %v1109_v29, %v990_v28 }
 0x149   : > { %1080 = vst [vmem:[%s1793_s21 + $0x78] sm:$0xff] %v998_v31  ;;  %v1477_v36 = vpop.f32.mrb[32].mxu0  ;;  %v1583_v38 = vpop.f32.mrb[32].mxu1  ;;  %v1153_v49 = vmul.f32 %v998_v31, %v998_v31 }
 0x14a   : > { %v1111_v37 = vadd.f32 %v1110_v35, %v995_v24  ;;  %v1182_v41 = vadd.f32 %v1181_v34, %v1151_v33  ;;  %v1478_v42 = vpop.f32.mrb[33].mxu0  ;;  %v1002_v45 = vpop.f32.mrb[33].mxu1 }
 0x14b   : > { %v1479_v46 = vadd.f32 %v1478_v42, %v1477_v36  ;;  %v1480_v47 = vpop.f32.mrb[34].mxu0  ;;  %v1584_v48 = vpop.f32.mrb[34].mxu1 }
 0x14c   : > { %v1183_v50 = vadd.f32 %v1182_v41, %v1152_v40  ;;  %v1481_v52 = vpop.f32.mrb[35].mxu0  ;;  %v1112_v53 = vadd.f32 %v1111_v37, %v998_v31  ;;  %v1005_v54 = vpop.f32.mrb[35].mxu1 }
 0x14d   : > { %v1482_v43 = vadd.f32 %v1481_v52, %v1480_v47  ;;  %v1003_v55 = vadd.f32 %v1479_v46, %v1002_v45 }
 0x14e   : > { %v1184_v57 = vadd.f32 %v1183_v50, %v1153_v49 }
 0x14f   : > { %1081 = vst [vmem:[%s1793_s21 + $0x80] sm:$0xff] %v1003_v55  ;;  %v1113_v58 = vadd.f32 %v1112_v53, %v1003_v55  ;;  %v1154_v59 = vmul.f32 %v1003_v55, %v1003_v55  ;;  %v1006_v60 = vadd.f32 %v1482_v43, %v1005_v54 }
 0x151   : > { %v1185_v61 = vadd.f32 %v1184_v57, %v1154_v59  ;;  %1082 = vst [vmem:[%s1793_s21 + $0x88] sm:$0xff] %v1006_v60  ;;  %v1114_v63 = vadd.f32 %v1113_v58, %v1006_v60  ;;  %v1155_v0 = vmul.f32 %v1006_v60, %v1006_v60  ;;  %v1483_v1 = vpop.f32.mrb[36].mxu0  ;;  %v1587_v2 = vpop.f32.mrb[36].mxu1 }
 0x152   : > { %v1484_v3 = vpop.f32.mrb[37].mxu0  ;;  %v1018_v62 = vpop.f32.mrb[37].mxu1 }
 0x153   : > { %v1186_v4 = vadd.f32 %v1185_v61, %v1155_v0  ;;  %v1485_v6 = vadd.f32 %v1484_v3, %v1483_v1  ;;  %v1486_v7 = vpop.f32.mrb[38].mxu0  ;;  %v1957_v8 = vpop.f32.mrb[38].mxu1 }
 0x154   : > { %v1487_v9 = vpop.f32.mrb[39].mxu0  ;;  %v1021_v10 = vpop.f32.mrb[39].mxu1 }
 0x155   : > { %v1011_v11 = vadd.f32 %v1583_v38, %v1485_v6  ;;  %v1488_v12 = vadd.f32 %v1487_v9, %v1486_v7 }
 0x157   : > { %1083 = vst [vmem:[%s1793_s21 + $0x90] sm:$0xff] %v1011_v11  ;;  %v1115_v14 = vadd.f32 %v1114_v63, %v1011_v11  ;;  %v1156_v13 = vmul.f32 %v1011_v11, %v1011_v11  ;;  %v1014_v16 = vadd.f32 %v1584_v48, %v1488_v12 }
 0x159   : > { %v1187_v17 = vadd.f32 %v1186_v4, %v1156_v13  ;;  %1084 = vst [vmem:[%s1793_s21 + $0x98] sm:$0xff] %v1014_v16  ;;  %v1116_v5 = vadd.f32 %v1115_v14, %v1014_v16  ;;  %v1157_v18 = vmul.f32 %v1014_v16, %v1014_v16  ;;  %v1489_v21 = vpop.f32.mrb[40].mxu0  ;;  %v1591_v22 = vpop.f32.mrb[40].mxu1 }
 0x15a   : > { %v1043_v23 = vadd.f32 %v1591_v22, %v1927_v27  ;;  %v1490_v19 = vpop.f32.mrb[41].mxu0  ;;  %v1034_v24 = vpop.f32.mrb[41].mxu1 }
 0x15b   : > { %v1188_v25 = vadd.f32 %v1187_v17, %v1157_v18  ;;  %v1491_v26 = vadd.f32 %v1490_v19, %v1489_v21  ;;  %v1035_v28 = vadd.f32 %v1923_v15, %v1034_v24  ;;  %v1492_v29 = vpop.f32.mrb[42].mxu0  ;;  %v1592_v30 = vpop.f32.mrb[42].mxu1 }
 0x15c   : > { %1091 = vst [vmem:[%s1793_s21 + $0xd0] sm:$0xff] %v1043_v23  ;;  %v1046_v31 = vadd.f32 %v1592_v30, %v1929_v32  ;;  %v1493_v33 = vpop.f32.mrb[43].mxu0  ;;  %v1037_v34 = vpop.f32.mrb[43].mxu1  ;;  %v1164_v6 = vmul.f32 %v1043_v23, %v1043_v23 }
 0x15d   : > { %v1019_v35 = vadd.f32 %v1491_v26, %v1018_v62  ;;  %1089 = vst [vmem:[%s1793_s21 + $0xc0] sm:$0xff] %v1035_v28  ;;  %v1494_v27 = vadd.f32 %v1493_v33, %v1492_v29  ;;  %v1038_v36 = vadd.f32 %v1925_v20, %v1037_v34  ;;  %v1162_v1 = vmul.f32 %v1035_v28, %v1035_v28 }
 0x15e   : > { %1092 = vst [vmem:[%s1793_s21 + $0xd8] sm:$0xff] %v1046_v31  ;;  %v1165_v9 = vmul.f32 %v1046_v31, %v1046_v31 }
 0x15f   : > { %1085 = vst [vmem:[%s1793_s21 + $0xa0] sm:$0xff] %v1019_v35  ;;  %v1117_v38 = vadd.f32 %v1116_v5, %v1019_v35  ;;  %v1158_v40 = vmul.f32 %v1019_v35, %v1019_v35  ;;  %v1022_v37 = vadd.f32 %v1494_v27, %v1021_v10  ;;  %1090 = vst [vmem:[%s1793_s21 + $0xc8] sm:$0xff] %v1038_v36  ;;  %v1097_v27 = vld [vmem:[%s2006_s3] sm:$0x1] }
 0x160   : > { %v1163_v62 = vmul.f32 %v1038_v36, %v1038_v36 }
 0x161   : > { %v1189_v15 = vadd.f32 %v1188_v25, %v1158_v40  ;;  %1086 = vst [vmem:[%s1793_s21 + $0xa8] sm:$0xff] %v1022_v37  ;;  %v1118_v41 = vadd.f32 %v1117_v38, %v1022_v37  ;;  %v1159_v42 = vmul.f32 %v1022_v37, %v1022_v37  ;;  %v1495_v32 = vpop.f32.mrb[44].mxu0  ;;  %v1595_v45 = vpop.f32.mrb[44].mxu1  ;;  %v1137_v40 = vld [vmem:[%s2006_s3 + $0x1] sm:$0x1] }
 0x162   : > { %v1059_v46 = vadd.f32 %v1595_v45, %v1935_v51  ;;  %v1496_v47 = vpop.f32.mrb[45].mxu0  ;;  %v1050_v20 = vpop.f32.mrb[45].mxu1 }
 0x163   : > { %v1190_v48 = vadd.f32 %v1189_v15, %v1159_v42  ;;  %v1497_v49 = vadd.f32 %v1496_v47, %v1495_v32  ;;  %v1051_v50 = vadd.f32 %v1931_v39, %v1050_v20  ;;  %v1498_v52 = vpop.f32.mrb[46].mxu0  ;;  %v1596_v53 = vpop.f32.mrb[46].mxu1 }
 0x164   : > { %1095 = vst [vmem:[%s1793_s21 + $0xf0] sm:$0xff] %v1059_v46  ;;  %v1062_v54 = vadd.f32 %v1596_v53, %v1937_v56  ;;  %v1499_v43 = vpop.f32.mrb[47].mxu0  ;;  %v1053_v55 = vpop.f32.mrb[47].mxu1  ;;  %v1168_v5 = vmul.f32 %v1059_v46, %v1059_v46 }
 0x165   : > { %v1027_v57 = vadd.f32 %v1587_v2, %v1497_v49  ;;  %1093 = vst [vmem:[%s1793_s21 + $0xe0] sm:$0xff] %v1051_v50  ;;  %v1500_v51 = vadd.f32 %v1499_v43, %v1498_v52  ;;  %v1054_v58 = vadd.f32 %v1933_v44, %v1053_v55  ;;  %v1166_v12 = vmul.f32 %v1051_v50, %v1051_v50 }
 0x166   : > { %1096 = vst [vmem:[%s1793_s21 + $0xf8] sm:$0xff] %v1062_v54  ;;  %v1169_v22 = vmul.f32 %v1062_v54, %v1062_v54 }
 0x167   : > { %1087 = vst [vmem:[%s1793_s21 + $0xb0] sm:$0xff] %v1027_v57  ;;  %v1119_v59 = vadd.f32 %v1118_v41, %v1027_v57  ;;  %v1160_v60 = vmul.f32 %v1027_v57, %v1027_v57  ;;  %v1030_v39 = vadd.f32 %v1957_v8, %v1500_v51  ;;  %1094 = vst [vmem:[%s1793_s21 + $0xe8] sm:$0xff] %v1054_v58 }
 0x168   : > { %v1167_v16 = vmul.f32 %v1054_v58, %v1054_v58 }
 0x169   : > { %v1191_v61 = vadd.f32 %v1190_v48, %v1160_v60  ;;  %1088 = vst [vmem:[%s1793_s21 + $0xb8] sm:$0xff] %v1030_v39  ;;  %v1120_v63 = vadd.f32 %v1119_v59, %v1030_v39  ;;  %v1161_v0 = vmul.f32 %v1030_v39, %v1030_v39 }
 0x16b   : > { %v1121_v56 = vadd.f32 %v1120_v63, %v1035_v28  ;;  %v1192_v3 = vadd.f32 %v1191_v61, %v1161_v0 }
 0x16d   : > { %v1122_v2 = vadd.f32 %v1121_v56, %v1038_v36  ;;  %v1193_v4 = vadd.f32 %v1192_v3, %v1162_v1 }
 0x16f   : > { %v1194_v7 = vadd.f32 %v1193_v4, %v1163_v62  ;;  %v1123_v44 = vadd.f32 %v1122_v2, %v1043_v23 }
 0x171   : > { %v1124_v10 = vadd.f32 %v1123_v44, %v1046_v31  ;;  %v1195_v11 = vadd.f32 %v1194_v7, %v1164_v6 }
 0x173   : > { %v1125_v14 = vadd.f32 %v1124_v10, %v1051_v50  ;;  %v1196_v8 = vadd.f32 %v1195_v11, %v1165_v9 }
 0x175   : > { %v1126_v13 = vadd.f32 %v1125_v14, %v1054_v58  ;;  %v1197_v17 = vadd.f32 %v1196_v8, %v1166_v12 }
 0x177   : > { %v1127_v18 = vadd.f32 %v1126_v13, %v1059_v46  ;;  %v1198_v21 = vadd.f32 %v1197_v17, %v1167_v16 }
 0x179   : > { %v1128_v19 = vadd.f32 %v1127_v18, %v1062_v54  ;;  %v1199_v24 = vadd.f32 %v1198_v21, %v1168_v5 }
 0x17b   : > { %v1129_v25 = vrot.slane %v1128_v19, 4  ;;  %v1200_v26 = vadd.f32 %v1199_v24, %v1169_v22 }
 0x17d   : > { %v1130_v28 = vadd.f32 %v1129_v25, %v1128_v19  ;;  %v1201_v29 = vrot.slane %v1200_v26, 4 }
 0x17f   : > { %v1131_v23 = vrot.slane %v1130_v28, 2  ;;  %v1202_v30 = vadd.f32 %v1201_v29, %v1200_v26 }
 0x181   : > { %v1132_v31 = vadd.f32 %v1131_v23, %v1130_v28  ;;  %v1203_v33 = vrot.slane %v1202_v30, 2 }
 0x183   : > { %v1133_v34 = vrot.slane %v1132_v31, 1  ;;  %v1204_v35 = vadd.f32 %v1203_v33, %v1202_v30 }
 0x185   : > { %v1134_v36 = vadd.f32 %v1133_v34, %v1132_v31  ;;  %v1205_v38 = vrot.slane %v1204_v35, 1 }
 0x187   : > { %v1135_v37 = vadd.f32 %v1134_v36, %v1097_v27  ;;  %v1206_v15 = vadd.f32 %v1205_v38, %v1204_v35 }
 0x189   : > { %1136 = vst [vmem:[%s2006_s3] sm:$0x1] %v1135_v37  ;;  %v1207_v41 = vadd.f32 %v1206_v15, %v1137_v40 }
 0x18b   : > { %1208 = vst [vmem:[%s2006_s3 + $0x1] sm:$0x1] %v1207_v41 }
 0x18c PF: > { %s14_s14 = sadd.s32 1, %s1749_s14   ;;  %s2007_s12 = smov %s1745_s13 }
 0x18d   : > { %p11_p6 = scmp.ge.s32.totalorder %s14_s14, 4   ;;  %s2008_s13 = smov %s2010_s15 }
 0x18f   :  { %13 = sbr.rel (!%p11_p6) target bundleno = 2 (0x2), region = 77 }

</bundles_post_ra>
